<compile_context>
chip_gen: v7x
topology: tpu7x:2x2x1
jax: 0.10.0
libtpu: 0.0.40
codegen_flags: <defaults>
</compile_context>

<pallas_src>
import functools

import jax
import jax.numpy as jnp
import numpy as np
from jax import lax
from jax.experimental import pallas as pl
from jax.experimental.pallas import tpu as pltpu

NEG_SLOPE = 0.01   # torch.nn.LeakyReLU() default negative_slope
_LANES = 128


def _round_up(n, m):
    return ((n + m - 1) // m) * m


def _leaky(v):
    return jnp.where(v >= 0, v, NEG_SLOPE * v)


def _leaky_twice(v):   # LeakyReLU applied twice == one select with slope**2 (slope > 0)
    return jnp.where(v >= 0, v, (NEG_SLOPE * NEG_SLOPE) * v)


# ----------------------------------------------------------------------------
# Fused kernel: all residual blocks + adaptive max pool + FC + L2 normalize
# ----------------------------------------------------------------------------
def _tcn_encoder_kernel(x_ref, w1_ref, b1_ref, w2_ref, b2_ref, wm_ref, bm_ref,
                        wfc_ref, bfc_ref, out_ref, xc_ref, *,
                        block_meta, kernel_size, pool_bins, normalize, matmul_dtype):
    # x_ref : (BT, L, CP) f32  activations, channels zero-padded to 128 lanes
    # w1/w2 : (NB, K*CP, CP) mdt  fused tap weights, w[t*CP+i, o] == torch W[o, i, t]
    # b1/b2 : (NB, 1, CP) f32
    # wm/bm : (NB, CP, CP) mdt / (NB, 1, CP) f32    1x1 shape-match conv
    # wfc   : (M*CP, CPO) mdt  (bin-major);  bfc: (1, CPO) f32
    # out   : (BT, CPO) f32    lane-dense padded embedding
    # xc_ref: (BT, L, K*CP) mdt persistent staging scratch for the fused conv operand
    BT, L, CP = x_ref.shape
    K = kernel_size
    rows = BT * L

    def causal_dilated_conv(xb, w_fused, bias, dilation):
        # xb: (BT, L, CP) already in matmul dtype (cast once per conv).
        # Stage the K causal time-shifts into lane chunks of the scratch, then do ONE
        # deep MXU contraction instead of K shallow ones.
        for t in range(K):
            s = min((K - 1 - t) * dilation, L)     # causal left shift of this tap
            lo, hi = t * CP, (t + 1) * CP          # 128-aligned lane chunk
            if s > 0:                              # zero history rows (tiny store)
                xc_ref[:, :s, lo:hi] = jnp.zeros((BT, s, CP), matmul_dtype)
            if s < L:
                xc_ref[:, s:, lo:hi] = xb[:, :L - s, :]
        xcat = xc_ref[...].reshape(rows, K * CP)
        y = jnp.dot(xcat, w_fused, preferred_element_type=jnp.float32)
        return y + bias                            # (rows, CP) f32

    x = x_ref[...]                                 # (BT, L, CP) f32
    for idx, (dilation, use_match) in enumerate(block_meta):
        xb = x.astype(matmul_dtype)                # single cast, reused by conv1 + shape-match
        # conv1 -> (Identity norm) -> LeakyReLU -> (Identity dropout)
        h = _leaky(causal_dilated_conv(xb, w1_ref[idx], b1_ref[idx], dilation))
        # conv2 -> LeakyReLU -> (Identity dropout) -> LeakyReLU (activation applied twice)
        hb = h.reshape(BT, L, CP).astype(matmul_dtype)
        h = _leaky_twice(causal_dilated_conv(hb, w2_ref[idx], b2_ref[idx], dilation))
        # 1x1 shape-match conv (or Identity) + residual + final activation
        if use_match:
            x2 = jnp.dot(xb.reshape(rows, CP), wm_ref[idx],
                         preferred_element_type=jnp.float32) + bm_ref[idx]
        else:
            x2 = x.reshape(rows, CP)
        x = _leaky(x2 + h).reshape(BT, L, CP)

    # AdaptiveMaxPool1d over time; bins lane-concatenated -> one FC matmul.
    if pool_bins == 1:
        pooled_cat = jnp.max(x, axis=1)                              # (BT, CP)
    else:
        t_idx = lax.broadcasted_iota(jnp.int32, (BT, L, CP), 1)
        pieces = []
        for m in range(pool_bins):
            s = (m * L) // pool_bins
            e = -(-((m + 1) * L) // pool_bins)                        # ceil bin edge
            in_bin = (t_idx >= s) & (t_idx < e)
            pieces.append(jnp.max(jnp.where(in_bin, x, -jnp.inf), axis=1))
        pooled_cat = jnp.concatenate(pieces, axis=-1)                 # (BT, M*CP)

    u = jnp.dot(pooled_cat.astype(matmul_dtype), wfc_ref[...],
                preferred_element_type=jnp.float32) + bfc_ref[...]
    if normalize:                                   # F.normalize(p=2, dim=1); padded lanes are 0
        ssq = jnp.sum(u * u, axis=-1, keepdims=True)
        u = u * lax.rsqrt(jnp.maximum(ssq, 1e-24))  # rsqrt on the EUP slot
    out_ref[...] = u


def _pick_batch_tile(B, L, min_rows=256):
    # Split 2-ways (one tile per v7x TensorCore) only if each half still has >= min_rows
    # matmul rows and the output block stays sublane-aligned; otherwise one grid step.
    half = B // 2
    if B % 2 == 0 and half * L >= min_rows and half % 8 == 0:
        return half
    return B


def _vmem_limit_bytes(bt, L, CP, CPO, NB, K, M, mdt):
    # Budget derived from actual shapes (activation + in-kernel copies + weights), capped
    # at 64 MiB so the same limit is valid on v7x as well as v5e/v6e.
    w_item = jnp.dtype(mdt).itemsize
    act = bt * L * CP
    weight_bytes = ((2 * K + 1) * NB * CP * CP + M * CP * CPO) * w_item \
                   + (3 * NB * CP + CPO) * 4
    est = (2 * act * 4                      # pipelined f32 input block (double-buffered)
           + 5 * act * 4                    # live f32 temporaries (x, h, residual, ...)
           + 2 * act * w_item               # matmul-dtype casts of x / h
           + 2 * bt * L * K * CP * w_item   # staging scratch + operand copy
           + 2 * weight_bytes               # weights (double-buffered by the pipeline)
           + 4 * bt * M * CP * 4 + 2 * bt * CPO * 4
           + (2 << 20))                     # headroom
    return int(min(max(est, 8 << 20), 64 << 20))


def tcn_encoder_forward(x_bcl, params, normalize_embedding=True, batch_tile=None):
    """x_bcl: (B, C_in, L), the PyTorch module's layout. Returns (B, out_channels)."""
    B, cin, L = x_bcl.shape
    CP, CPO = params["cp"], params["cpo"]
    NB = len(params["block_meta"])
    K = params["kernel_size"]
    M = params["pool_bins"]
    mdt = params["matmul_dtype"]

    # NCL -> NLC (time on sublanes, channels on lanes) and pad channels to 128 lanes.
    x = jnp.transpose(x_bcl, (0, 2, 1)).astype(jnp.float32)
    x = jnp.pad(x, ((0, 0), (0, 0), (0, CP - cin)))

    bt = _pick_batch_tile(B, L) if batch_tile is None else min(batch_tile, B)
    assert B % bt == 0, "batch_tile must divide the batch size"

    kern = functools.partial(
        _tcn_encoder_kernel,
        block_meta=params["block_meta"], kernel_size=K, pool_bins=M,
        normalize=normalize_embedding, matmul_dtype=mdt)

    out_padded = pl.pallas_call(
        kern,
        out_shape=jax.ShapeDtypeStruct((B, CPO), jnp.float32),
        grid=(B // bt,),
        in_specs=[
            pl.BlockSpec((bt, L, CP), lambda i: (i, 0, 0)),
            pl.BlockSpec((NB, K * CP, CP), lambda i: (0, 0, 0)),
            pl.BlockSpec((NB, 1, CP), lambda i: (0, 0, 0)),
            pl.BlockSpec((NB, K * CP, CP), lambda i: (0, 0, 0)),
            pl.BlockSpec((NB, 1, CP), lambda i: (0, 0, 0)),
            pl.BlockSpec((NB, CP, CP), lambda i: (0, 0, 0)),
            pl.BlockSpec((NB, 1, CP), lambda i: (0, 0, 0)),
            pl.BlockSpec((M * CP, CPO), lambda i: (0, 0)),
            pl.BlockSpec((1, CPO), lambda i: (0, 0)),
        ],
        out_specs=pl.BlockSpec((bt, CPO), lambda i: (i, 0)),
        scratch_shapes=[pltpu.VMEM((bt, L, K * CP), mdt)],
        compiler_params=pltpu.CompilerParams(
            dimension_semantics=("parallel",),
            vmem_limit_bytes=_vmem_limit_bytes(bt, L, CP, CPO, NB, K, M, mdt),
        ),
    )(x, params["w1"], params["b1"], params["w2"], params["b2"],
      params["wm"], params["bm"], params["w_fc"], params["b_fc"])
    return out_padded[:, : params["out_channels"]]


# ----------------------------------------------------------------------------
# Parameter construction (matches the PyTorch module's shapes; uniform init like torch)
# ----------------------------------------------------------------------------
def init_tcn_encoder_params(key, in_channels, out_channels, kernel_size,
                            tcn_channels, tcn_layers, tcn_out_channels,
                            maxpool_out_channels=1, matmul_dtype=jnp.bfloat16):
    K = kernel_size
    dilations = [2 ** i for i in range(tcn_layers + 1)]
    filters = [tcn_channels] * tcn_layers + [tcn_out_channels]
    NB = len(dilations)
    M = int(maxpool_out_channels)
    CP = _round_up(max([in_channels] + list(filters)), _LANES)
    CPO = _round_up(out_channels, _LANES)

    w1_all = np.zeros((NB, K, CP, CP), np.float32)
    b1_all = np.zeros((NB, 1, CP), np.float32)
    w2_all = np.zeros((NB, K, CP, CP), np.float32)
    b2_all = np.zeros((NB, 1, CP), np.float32)
    wm_all = np.zeros((NB, CP, CP), np.float32)
    bm_all = np.zeros((NB, 1, CP), np.float32)

    block_meta, blocks_raw = [], []
    for i, d in enumerate(dilations):
        cf = filters[i]
        cin = in_channels if i == 0 else filters[i - 1]
        key, k1, k2, k3, k4, k5, k6 = jax.random.split(key, 7)
        s1 = float(1.0 / np.sqrt(cin * K))
        s2 = float(1.0 / np.sqrt(cf * K))
        # conv weights stored as (K, Cin, Cout): w[t, i, o] == torch_weight[o, i, t]
        w1 = jax.random.uniform(k1, (K, cin, cf), jnp.float32, -s1, s1)
        b1 = jax.random.uniform(k2, (cf,), jnp.float32, -s1, s1)
        w2 = jax.random.uniform(k3, (K, cf, cf), jnp.float32, -s2, s2)
        b2 = jax.random.uniform(k4, (cf,), jnp.float32, -s2, s2)
        use_match = cin != cf
        if use_match:
            sm = float(1.0 / np.sqrt(cin))
            wm = jax.random.uniform(k5, (cin, cf), jnp.float32, -sm, sm)
            bm = jax.random.uniform(k6, (cf,), jnp.float32, -sm, sm)
        else:  # torch uses Identity when channel counts match
            wm = jnp.eye(cf, dtype=jnp.float32)
            bm = jnp.zeros((cf,), jnp.float32)
        w1_all[i, :, :cin, :cf] = np.asarray(w1)
        b1_all[i, 0, :cf] = np.asarray(b1)
        w2_all[i, :, :cf, :cf] = np.asarray(w2)
        b2_all[i, 0, :cf] = np.asarray(b2)
        wm_all[i, :cin, :cf] = np.asarray(wm)
        bm_all[i, 0, :cf] = np.asarray(bm)
        block_meta.append((int(d), bool(use_match)))
        blocks_raw.append(dict(w1=w1, b1=b1, w2=w2, b2=b2, wm=wm, bm=bm,
                               dilation=int(d), use_match=bool(use_match)))

    key, kw, kb = jax.random.split(key, 3)
    sfc = float(1.0 / np.sqrt(tcn_out_channels * M))
    # fc weight stored as (M, C, OUT): w_fc[m, c, o] == torch_linear_weight[o, c*M + m]
    w_fc = jax.random.uniform(kw, (M, tcn_out_channels, out_channels), jnp.float32, -sfc, sfc)
    b_fc = jax.random.uniform(kb, (out_channels,), jnp.float32, -sfc, sfc)
    wfc_all = np.zeros((M, CP, CPO), np.float32)
    wfc_all[:, :tcn_out_channels, :out_channels] = np.asarray(w_fc)
    bfc_all = np.zeros((1, CPO), np.float32)
    bfc_all[0, :out_channels] = np.asarray(b_fc)

    return dict(
        # channel-padded, block-stacked weights, pre-reshaped for the fused contractions
        w1=jnp.asarray(w1_all.reshape(NB, K * CP, CP), matmul_dtype), b1=jnp.asarray(b1_all),
        w2=jnp.asarray(w2_all.reshape(NB, K * CP, CP), matmul_dtype), b2=jnp.asarray(b2_all),
        wm=jnp.asarray(wm_all, matmul_dtype), bm=jnp.asarray(bm_all),
        w_fc=jnp.asarray(wfc_all.reshape(M * CP, CPO), matmul_dtype), b_fc=jnp.asarray(bfc_all),
        block_meta=tuple(block_meta), kernel_size=K, pool_bins=M,
        cp=CP, cpo=CPO, out_channels=out_channels, matmul_dtype=matmul_dtype,
        # unpadded originals for the pure-JAX reference
        blocks_raw=blocks_raw, w_fc_raw=w_fc, b_fc_raw=b_fc,
    )


# ----------------------------------------------------------------------------
# Pure-JAX reference: every contraction in f32 (no bf16 x bf16 dots on the host backend);
# operands are rounded through the matmul dtype so it mirrors the MXU bf16-operand /
# f32-accumulate arithmetic of the kernel.
# ----------------------------------------------------------------------------
def reference_forward(x_bcl, params, normalize_embedding=True):
    mdt = params["matmul_dtype"]
    K = params["kernel_size"]
    q = lambda a: a.astype(mdt).astype(jnp.float32)
    x = x_bcl.astype(jnp.float32)                      # (B, C, L)
    for blk in params["blocks_raw"]:
        d = blk["dilation"]

        def cconv(inp, w, b, d=d):
            pad = d * (K - 1)                          # causal "SAME" left pad
            inp_p = jnp.pad(inp, ((0, 0), (0, 0), (pad, 0)))
            wt = jnp.transpose(w, (2, 1, 0))           # (O, I, K)
            y = lax.conv_general_dilated(
                q(inp_p), q(wt), window_strides=(1,), padding="VALID",
                rhs_dilation=(d,), dimension_numbers=("NCH", "OIH", "NCH"))
            return y + b.reshape(1, -1, 1)

        h = _leaky(cconv(x, blk["w1"], blk["b1"]))
        h = _leaky_twice(cconv(h, blk["w2"], blk["b2"]))
        if blk["use_match"]:
            x2 = jnp.einsum("bcl,cf->bfl", q(x), q(blk["wm"])) + blk["bm"].reshape(1, -1, 1)
        else:
            x2 = x
        x = _leaky(x2 + h)

    B, C, L = x.shape
    M = params["pool_bins"]
    feats = []
    for j in range(M):                                 # AdaptiveMaxPool1d bins
        s = (j * L) // M
        e = -(-((j + 1) * L) // M)
        feats.append(jnp.max(x[:, :, s:e], axis=-1))
    pooled = jnp.stack(feats, axis=-1)                 # (B, C, M)
    flat = pooled.reshape(B, C * M)                    # torch Flatten order (channel-major)
    W = jnp.transpose(params["w_fc_raw"], (2, 1, 0)).reshape(params["out_channels"], C * M)
    u = jnp.dot(q(flat), q(W).T) + params["b_fc_raw"][None, :]
    if normalize_embedding:
        n = jnp.sqrt(jnp.sum(u * u, axis=1, keepdims=True))
        u = u / jnp.maximum(n, 1e-12)
    return u


if __name__ == "__main__":
    B, L = 2, 16
    in_channels, out_channels = 4, 8
    kernel_size = 3
    tcn_channels, tcn_layers, tcn_out_channels = 8, 2, 16
    maxpool_out_channels = 1

    key = jax.random.PRNGKey(0)
    key, kx = jax.random.split(key)
    x = jax.random.normal(kx, (B, in_channels, L), jnp.float32)   # PyTorch layout (B, C_in, L)

    params = init_tcn_encoder_params(key, in_channels, out_channels, kernel_size,
                                     tcn_channels, tcn_layers, tcn_out_channels,
                                     maxpool_out_channels)

    fwd = jax.jit(lambda inp: tcn_encoder_forward(inp, params, normalize_embedding=True))
    out = jax.block_until_ready(fwd(x))
    assert out.shape == (B, out_channels)

    ref = jax.block_until_ready(reference_forward(x, params, normalize_embedding=True))
    # Kernel uses bf16 MXU operands / f32 accumulation; reference rounds operands to bf16 and
    # accumulates in f32, so the two agree to well within this tolerance.
    np.testing.assert_allclose(np.asarray(out), np.asarray(ref), rtol=2e-2, atol=2e-2)

    print("KERNEL_OK")
</pallas_src>

<mosaic_0001>
module attributes {stable_mosaic.version = 11 : i64} {
  func.func @_tcn_encoder_kernel(%arg0: i32, %arg1: memref<2x16x128xf32, #tpu.memory_space<vmem>>, %arg2: memref<3x384x128xbf16, #tpu.memory_space<vmem>>, %arg3: memref<3x1x128xf32, #tpu.memory_space<vmem>>, %arg4: memref<3x384x128xbf16, #tpu.memory_space<vmem>>, %arg5: memref<3x1x128xf32, #tpu.memory_space<vmem>>, %arg6: memref<3x128x128xbf16, #tpu.memory_space<vmem>>, %arg7: memref<3x1x128xf32, #tpu.memory_space<vmem>>, %arg8: memref<128x128xbf16, #tpu.memory_space<vmem>>, %arg9: memref<1x128xf32, #tpu.memory_space<vmem>>, %arg10: memref<2x128xf32, #tpu.memory_space<vmem>>, %arg11: memref<2x16x384xbf16, #tpu.memory_space<vmem>>) attributes {dimension_semantics = [#tpu.dimension_semantics<parallel>], iteration_bounds = array<i64: 1>, scalar_prefetch = 0 : i64, scratch_operands = 1 : i64, tpu.core_type = #tpu.core_type<tc>, window_params = [{transform_indices = @transform_0, window_bounds = array<i64: 2, 16, 128>}, {pipeline_mode = #tpu.pipeline_mode<synchronous>, transform_indices = @transform_1, window_bounds = array<i64: 3, 384, 128>}, {pipeline_mode = #tpu.pipeline_mode<synchronous>, transform_indices = @transform_2, window_bounds = array<i64: 3, 1, 128>}, {pipeline_mode = #tpu.pipeline_mode<synchronous>, transform_indices = @transform_3, window_bounds = array<i64: 3, 384, 128>}, {pipeline_mode = #tpu.pipeline_mode<synchronous>, transform_indices = @transform_4, window_bounds = array<i64: 3, 1, 128>}, {pipeline_mode = #tpu.pipeline_mode<synchronous>, transform_indices = @transform_5, window_bounds = array<i64: 3, 128, 128>}, {pipeline_mode = #tpu.pipeline_mode<synchronous>, transform_indices = @transform_6, window_bounds = array<i64: 3, 1, 128>}, {pipeline_mode = #tpu.pipeline_mode<synchronous>, transform_indices = @transform_7, window_bounds = array<i64: 128, 128>}, {pipeline_mode = #tpu.pipeline_mode<synchronous>, transform_indices = @transform_8, window_bounds = array<i64: 1, 128>}, {transform_indices = @transform_9, window_bounds = array<i64: 2, 128>}]} {
    %c0 = arith.constant 0 : index
    %c0_0 = arith.constant 0 : index
    %c0_1 = arith.constant 0 : index
    %0 = vector.load %arg1[%c0, %c0_0, %c0_1] : memref<2x16x128xf32, #tpu.memory_space<vmem>>, vector<2x16x128xf32>
    %1 = arith.truncf %0 : vector<2x16x128xf32> to vector<2x16x128xbf16>
    %c0_2 = arith.constant 0 : index
    %c0_3 = arith.constant 0 : index
    %c0_4 = arith.constant 0 : index
    %2 = vector.load %arg2[%c0_2, %c0_3, %c0_4] : memref<3x384x128xbf16, #tpu.memory_space<vmem>>, vector<1x384x128xbf16>
    %3 = vector.shape_cast %2 : vector<1x384x128xbf16> to vector<384x128xbf16>
    %c0_5 = arith.constant 0 : index
    %c0_6 = arith.constant 0 : index
    %c0_7 = arith.constant 0 : index
    %4 = vector.load %arg3[%c0_5, %c0_6, %c0_7] : memref<3x1x128xf32, #tpu.memory_space<vmem>>, vector<1x1x128xf32>
    %5 = vector.shape_cast %4 : vector<1x1x128xf32> to vector<1x128xf32>
    %cst = arith.constant 0.000000e+00 : bf16
    %6 = vector.broadcast %cst : bf16 to vector<2x2x128xbf16>
    %c0_8 = arith.constant 0 : index
    %c0_9 = arith.constant 0 : index
    %c0_10 = arith.constant 0 : index
    %7 = vector.load %arg11[%c0_8, %c0_9, %c0_10] : memref<2x16x384xbf16, #tpu.memory_space<vmem>>, vector<2x2x128xbf16>
    tpu.vector_store %arg11[%c0_8, %c0_9, %c0_10], %6 {strides = array<i32>} : memref<2x16x384xbf16, #tpu.memory_space<vmem>>, vector<2x2x128xbf16>,
    %8 = vector.extract_strided_slice %1 {offsets = [0, 0, 0], sizes = [2, 14, 128], strides = [1, 1, 1]} : vector<2x16x128xbf16> to vector<2x14x128xbf16>
    %c0_11 = arith.constant 0 : index
    %c2 = arith.constant 2 : index
    %c0_12 = arith.constant 0 : index
    %9 = vector.load %arg11[%c0_11, %c2, %c0_12] : memref<2x16x384xbf16, #tpu.memory_space<vmem>>, vector<2x14x128xbf16>
    tpu.vector_store %arg11[%c0_11, %c2, %c0_12], %8 {strides = array<i32>} : memref<2x16x384xbf16, #tpu.memory_space<vmem>>, vector<2x14x128xbf16>,
    %cst_13 = arith.constant 0.000000e+00 : bf16
    %10 = vector.broadcast %cst_13 : bf16 to vector<2x1x128xbf16>
    %c0_14 = arith.constant 0 : index
    %c0_15 = arith.constant 0 : index
    %c128 = arith.constant 128 : index
    %11 = vector.load %arg11[%c0_14, %c0_15, %c128] : memref<2x16x384xbf16, #tpu.memory_space<vmem>>, vector<2x1x128xbf16>
    tpu.vector_store %arg11[%c0_14, %c0_15, %c128], %10 {strides = array<i32>} : memref<2x16x384xbf16, #tpu.memory_space<vmem>>, vector<2x1x128xbf16>,
    %12 = vector.extract_strided_slice %1 {offsets = [0, 0, 0], sizes = [2, 15, 128], strides = [1, 1, 1]} : vector<2x16x128xbf16> to vector<2x15x128xbf16>
    %c0_16 = arith.constant 0 : index
    %c1 = arith.constant 1 : index
    %c128_17 = arith.constant 128 : index
    %13 = vector.load %arg11[%c0_16, %c1, %c128_17] : memref<2x16x384xbf16, #tpu.memory_space<vmem>>, vector<2x15x128xbf16>
    tpu.vector_store %arg11[%c0_16, %c1, %c128_17], %12 {strides = array<i32>} : memref<2x16x384xbf16, #tpu.memory_space<vmem>>, vector<2x15x128xbf16>,
    %c0_18 = arith.constant 0 : index
    %c0_19 = arith.constant 0 : index
    %c256 = arith.constant 256 : index
    %14 = vector.load %arg11[%c0_18, %c0_19, %c256] : memref<2x16x384xbf16, #tpu.memory_space<vmem>>, vector<2x16x128xbf16>
    tpu.vector_store %arg11[%c0_18, %c0_19, %c256], %1 {strides = array<i32>} : memref<2x16x384xbf16, #tpu.memory_space<vmem>>, vector<2x16x128xbf16>,
    %c0_20 = arith.constant 0 : index
    %c0_21 = arith.constant 0 : index
    %c0_22 = arith.constant 0 : index
    %15 = vector.load %arg11[%c0_20, %c0_21, %c0_22] : memref<2x16x384xbf16, #tpu.memory_space<vmem>>, vector<2x16x384xbf16>
    %16 = vector.shape_cast %15 : vector<2x16x384xbf16> to vector<32x384xbf16>
    %cst_23 = arith.constant dense<0.000000e+00> : vector<32x128xf32>
    %17 = tpu.matmul %16, %3, %cst_23 {dimension_numbers = #tpu.dot_dimension_numbers<[1], [0], [0], [1], [0, 0, 1, 1], [], []>} : vector<32x384xbf16>, vector<384x128xbf16>, vector<32x128xf32> -> vector<32x128xf32>
    %18 = vector.broadcast %5 : vector<1x128xf32> to vector<32x128xf32>
    %19 = arith.addf %17, %18 : vector<32x128xf32>
    %cst_24 = arith.constant 0.000000e+00 : f32
    %20 = vector.broadcast %cst_24 : f32 to vector<32x128xf32>
    %21 = arith.cmpf oge, %19, %20 : vector<32x128xf32>
    %cst_25 = arith.constant 0.00999999977 : f32
    %22 = vector.broadcast %cst_25 : f32 to vector<32x128xf32>
    %23 = arith.mulf %22, %19 : vector<32x128xf32>
    %24 = arith.select %21, %19, %23 : vector<32x128xi1>, vector<32x128xf32>
    %25 = vector.shape_cast %24 : vector<32x128xf32> to vector<2x16x128xf32>
    %26 = arith.truncf %25 : vector<2x16x128xf32> to vector<2x16x128xbf16>
    %c0_26 = arith.constant 0 : index
    %c0_27 = arith.constant 0 : index
    %c0_28 = arith.constant 0 : index
    %27 = vector.load %arg4[%c0_26, %c0_27, %c0_28] : memref<3x384x128xbf16, #tpu.memory_space<vmem>>, vector<1x384x128xbf16>
    %28 = vector.shape_cast %27 : vector<1x384x128xbf16> to vector<384x128xbf16>
    %c0_29 = arith.constant 0 : index
    %c0_30 = arith.constant 0 : index
    %c0_31 = arith.constant 0 : index
    %29 = vector.load %arg5[%c0_29, %c0_30, %c0_31] : memref<3x1x128xf32, #tpu.memory_space<vmem>>, vector<1x1x128xf32>
    %30 = vector.shape_cast %29 : vector<1x1x128xf32> to vector<1x128xf32>
    %cst_32 = arith.constant 0.000000e+00 : bf16
    %31 = vector.broadcast %cst_32 : bf16 to vector<2x2x128xbf16>
    %c0_33 = arith.constant 0 : index
    %c0_34 = arith.constant 0 : index
    %c0_35 = arith.constant 0 : index
    %32 = vector.load %arg11[%c0_33, %c0_34, %c0_35] : memref<2x16x384xbf16, #tpu.memory_space<vmem>>, vector<2x2x128xbf16>
    tpu.vector_store %arg11[%c0_33, %c0_34, %c0_35], %31 {strides = array<i32>} : memref<2x16x384xbf16, #tpu.memory_space<vmem>>, vector<2x2x128xbf16>,
    %33 = vector.extract_strided_slice %26 {offsets = [0, 0, 0], sizes = [2, 14, 128], strides = [1, 1, 1]} : vector<2x16x128xbf16> to vector<2x14x128xbf16>
    %c0_36 = arith.constant 0 : index
    %c2_37 = arith.constant 2 : index
    %c0_38 = arith.constant 0 : index
    %34 = vector.load %arg11[%c0_36, %c2_37, %c0_38] : memref<2x16x384xbf16, #tpu.memory_space<vmem>>, vector<2x14x128xbf16>
    tpu.vector_store %arg11[%c0_36, %c2_37, %c0_38], %33 {strides = array<i32>} : memref<2x16x384xbf16, #tpu.memory_space<vmem>>, vector<2x14x128xbf16>,
    %cst_39 = arith.constant 0.000000e+00 : bf16
    %35 = vector.broadcast %cst_39 : bf16 to vector<2x1x128xbf16>
    %c0_40 = arith.constant 0 : index
    %c0_41 = arith.constant 0 : index
    %c128_42 = arith.constant 128 : index
    %36 = vector.load %arg11[%c0_40, %c0_41, %c128_42] : memref<2x16x384xbf16, #tpu.memory_space<vmem>>, vector<2x1x128xbf16>
    tpu.vector_store %arg11[%c0_40, %c0_41, %c128_42], %35 {strides = array<i32>} : memref<2x16x384xbf16, #tpu.memory_space<vmem>>, vector<2x1x128xbf16>,
    %37 = vector.extract_strided_slice %26 {offsets = [0, 0, 0], sizes = [2, 15, 128], strides = [1, 1, 1]} : vector<2x16x128xbf16> to vector<2x15x128xbf16>
    %c0_43 = arith.constant 0 : index
    %c1_44 = arith.constant 1 : index
    %c128_45 = arith.constant 128 : index
    %38 = vector.load %arg11[%c0_43, %c1_44, %c128_45] : memref<2x16x384xbf16, #tpu.memory_space<vmem>>, vector<2x15x128xbf16>
    tpu.vector_store %arg11[%c0_43, %c1_44, %c128_45], %37 {strides = array<i32>} : memref<2x16x384xbf16, #tpu.memory_space<vmem>>, vector<2x15x128xbf16>,
    %c0_46 = arith.constant 0 : index
    %c0_47 = arith.constant 0 : index
    %c256_48 = arith.constant 256 : index
    %39 = vector.load %arg11[%c0_46, %c0_47, %c256_48] : memref<2x16x384xbf16, #tpu.memory_space<vmem>>, vector<2x16x128xbf16>
    tpu.vector_store %arg11[%c0_46, %c0_47, %c256_48], %26 {strides = array<i32>} : memref<2x16x384xbf16, #tpu.memory_space<vmem>>, vector<2x16x128xbf16>,
    %c0_49 = arith.constant 0 : index
    %c0_50 = arith.constant 0 : index
    %c0_51 = arith.constant 0 : index
    %40 = vector.load %arg11[%c0_49, %c0_50, %c0_51] : memref<2x16x384xbf16, #tpu.memory_space<vmem>>, vector<2x16x384xbf16>
    %41 = vector.shape_cast %40 : vector<2x16x384xbf16> to vector<32x384xbf16>
    %cst_52 = arith.constant dense<0.000000e+00> : vector<32x128xf32>
    %42 = tpu.matmul %41, %28, %cst_52 {dimension_numbers = #tpu.dot_dimension_numbers<[1], [0], [0], [1], [0, 0, 1, 1], [], []>} : vector<32x384xbf16>, vector<384x128xbf16>, vector<32x128xf32> -> vector<32x128xf32>
    %43 = vector.broadcast %30 : vector<1x128xf32> to vector<32x128xf32>
    %44 = arith.addf %42, %43 : vector<32x128xf32>
    %cst_53 = arith.constant 0.000000e+00 : f32
    %45 = vector.broadcast %cst_53 : f32 to vector<32x128xf32>
    %46 = arith.cmpf oge, %44, %45 : vector<32x128xf32>
    %cst_54 = arith.constant 9.99999974E-5 : f32
    %47 = vector.broadcast %cst_54 : f32 to vector<32x128xf32>
    %48 = arith.mulf %47, %44 : vector<32x128xf32>
    %49 = arith.select %46, %44, %48 : vector<32x128xi1>, vector<32x128xf32>
    %50 = vector.shape_cast %1 : vector<2x16x128xbf16> to vector<32x128xbf16>
    %c0_55 = arith.constant 0 : index
    %c0_56 = arith.constant 0 : index
    %c0_57 = arith.constant 0 : index
    %51 = vector.load %arg6[%c0_55, %c0_56, %c0_57] : memref<3x128x128xbf16, #tpu.memory_space<vmem>>, vector<1x128x128xbf16>
    %52 = vector.shape_cast %51 : vector<1x128x128xbf16> to vector<128x128xbf16>
    %cst_58 = arith.constant dense<0.000000e+00> : vector<32x128xf32>
    %53 = tpu.matmul %50, %52, %cst_58 {dimension_numbers = #tpu.dot_dimension_numbers<[1], [0], [0], [1], [0, 0, 1, 1], [], []>} : vector<32x128xbf16>, vector<128x128xbf16>, vector<32x128xf32> -> vector<32x128xf32>
    %c0_59 = arith.constant 0 : index
    %c0_60 = arith.constant 0 : index
    %c0_61 = arith.constant 0 : index
    %54 = vector.load %arg7[%c0_59, %c0_60, %c0_61] : memref<3x1x128xf32, #tpu.memory_space<vmem>>, vector<1x1x128xf32>
    %55 = vector.shape_cast %54 : vector<1x1x128xf32> to vector<1x128xf32>
    %56 = vector.broadcast %55 : vector<1x128xf32> to vector<32x128xf32>
    %57 = arith.addf %53, %56 : vector<32x128xf32>
    %58 = arith.addf %57, %49 : vector<32x128xf32>
    %cst_62 = arith.constant 0.000000e+00 : f32
    %59 = vector.broadcast %cst_62 : f32 to vector<32x128xf32>
    %60 = arith.cmpf oge, %58, %59 : vector<32x128xf32>
    %cst_63 = arith.constant 0.00999999977 : f32
    %61 = vector.broadcast %cst_63 : f32 to vector<32x128xf32>
    %62 = arith.mulf %61, %58 : vector<32x128xf32>
    %63 = arith.select %60, %58, %62 : vector<32x128xi1>, vector<32x128xf32>
    %64 = vector.shape_cast %63 : vector<32x128xf32> to vector<2x16x128xf32>
    %65 = arith.truncf %64 : vector<2x16x128xf32> to vector<2x16x128xbf16>
    %c1_64 = arith.constant 1 : index
    %c0_65 = arith.constant 0 : index
    %c0_66 = arith.constant 0 : index
    %66 = vector.load %arg2[%c1_64, %c0_65, %c0_66] : memref<3x384x128xbf16, #tpu.memory_space<vmem>>, vector<1x384x128xbf16>
    %67 = vector.shape_cast %66 : vector<1x384x128xbf16> to vector<384x128xbf16>
    %c1_67 = arith.constant 1 : index
    %c0_68 = arith.constant 0 : index
    %c0_69 = arith.constant 0 : index
    %68 = vector.load %arg3[%c1_67, %c0_68, %c0_69] : memref<3x1x128xf32, #tpu.memory_space<vmem>>, vector<1x1x128xf32>
    %69 = vector.shape_cast %68 : vector<1x1x128xf32> to vector<1x128xf32>
    %cst_70 = arith.constant 0.000000e+00 : bf16
    %70 = vector.broadcast %cst_70 : bf16 to vector<2x4x128xbf16>
    %c0_71 = arith.constant 0 : index
    %c0_72 = arith.constant 0 : index
    %c0_73 = arith.constant 0 : index
    %71 = vector.load %arg11[%c0_71, %c0_72, %c0_73] : memref<2x16x384xbf16, #tpu.memory_space<vmem>>, vector<2x4x128xbf16>
    tpu.vector_store %arg11[%c0_71, %c0_72, %c0_73], %70 {strides = array<i32>} : memref<2x16x384xbf16, #tpu.memory_space<vmem>>, vector<2x4x128xbf16>,
    %72 = vector.extract_strided_slice %65 {offsets = [0, 0, 0], sizes = [2, 12, 128], strides = [1, 1, 1]} : vector<2x16x128xbf16> to vector<2x12x128xbf16>
    %c0_74 = arith.constant 0 : index
    %c4 = arith.constant 4 : index
    %c0_75 = arith.constant 0 : index
    %73 = vector.load %arg11[%c0_74, %c4, %c0_75] : memref<2x16x384xbf16, #tpu.memory_space<vmem>>, vector<2x12x128xbf16>
    tpu.vector_store %arg11[%c0_74, %c4, %c0_75], %72 {strides = array<i32>} : memref<2x16x384xbf16, #tpu.memory_space<vmem>>, vector<2x12x128xbf16>,
    %cst_76 = arith.constant 0.000000e+00 : bf16
    %74 = vector.broadcast %cst_76 : bf16 to vector<2x2x128xbf16>
    %c0_77 = arith.constant 0 : index
    %c0_78 = arith.constant 0 : index
    %c128_79 = arith.constant 128 : index
    %75 = vector.load %arg11[%c0_77, %c0_78, %c128_79] : memref<2x16x384xbf16, #tpu.memory_space<vmem>>, vector<2x2x128xbf16>
    tpu.vector_store %arg11[%c0_77, %c0_78, %c128_79], %74 {strides = array<i32>} : memref<2x16x384xbf16, #tpu.memory_space<vmem>>, vector<2x2x128xbf16>,
    %76 = vector.extract_strided_slice %65 {offsets = [0, 0, 0], sizes = [2, 14, 128], strides = [1, 1, 1]} : vector<2x16x128xbf16> to vector<2x14x128xbf16>
    %c0_80 = arith.constant 0 : index
    %c2_81 = arith.constant 2 : index
    %c128_82 = arith.constant 128 : index
    %77 = vector.load %arg11[%c0_80, %c2_81, %c128_82] : memref<2x16x384xbf16, #tpu.memory_space<vmem>>, vector<2x14x128xbf16>
    tpu.vector_store %arg11[%c0_80, %c2_81, %c128_82], %76 {strides = array<i32>} : memref<2x16x384xbf16, #tpu.memory_space<vmem>>, vector<2x14x128xbf16>,
    %c0_83 = arith.constant 0 : index
    %c0_84 = arith.constant 0 : index
    %c256_85 = arith.constant 256 : index
    %78 = vector.load %arg11[%c0_83, %c0_84, %c256_85] : memref<2x16x384xbf16, #tpu.memory_space<vmem>>, vector<2x16x128xbf16>
    tpu.vector_store %arg11[%c0_83, %c0_84, %c256_85], %65 {strides = array<i32>} : memref<2x16x384xbf16, #tpu.memory_space<vmem>>, vector<2x16x128xbf16>,
    %c0_86 = arith.constant 0 : index
    %c0_87 = arith.constant 0 : index
    %c0_88 = arith.constant 0 : index
    %79 = vector.load %arg11[%c0_86, %c0_87, %c0_88] : memref<2x16x384xbf16, #tpu.memory_space<vmem>>, vector<2x16x384xbf16>
    %80 = vector.shape_cast %79 : vector<2x16x384xbf16> to vector<32x384xbf16>
    %cst_89 = arith.constant dense<0.000000e+00> : vector<32x128xf32>
    %81 = tpu.matmul %80, %67, %cst_89 {dimension_numbers = #tpu.dot_dimension_numbers<[1], [0], [0], [1], [0, 0, 1, 1], [], []>} : vector<32x384xbf16>, vector<384x128xbf16>, vector<32x128xf32> -> vector<32x128xf32>
    %82 = vector.broadcast %69 : vector<1x128xf32> to vector<32x128xf32>
    %83 = arith.addf %81, %82 : vector<32x128xf32>
    %cst_90 = arith.constant 0.000000e+00 : f32
    %84 = vector.broadcast %cst_90 : f32 to vector<32x128xf32>
    %85 = arith.cmpf oge, %83, %84 : vector<32x128xf32>
    %cst_91 = arith.constant 0.00999999977 : f32
    %86 = vector.broadcast %cst_91 : f32 to vector<32x128xf32>
    %87 = arith.mulf %86, %83 : vector<32x128xf32>
    %88 = arith.select %85, %83, %87 : vector<32x128xi1>, vector<32x128xf32>
    %89 = vector.shape_cast %88 : vector<32x128xf32> to vector<2x16x128xf32>
    %90 = arith.truncf %89 : vector<2x16x128xf32> to vector<2x16x128xbf16>
    %c1_92 = arith.constant 1 : index
    %c0_93 = arith.constant 0 : index
    %c0_94 = arith.constant 0 : index
    %91 = vector.load %arg4[%c1_92, %c0_93, %c0_94] : memref<3x384x128xbf16, #tpu.memory_space<vmem>>, vector<1x384x128xbf16>
    %92 = vector.shape_cast %91 : vector<1x384x128xbf16> to vector<384x128xbf16>
    %c1_95 = arith.constant 1 : index
    %c0_96 = arith.constant 0 : index
    %c0_97 = arith.constant 0 : index
    %93 = vector.load %arg5[%c1_95, %c0_96, %c0_97] : memref<3x1x128xf32, #tpu.memory_space<vmem>>, vector<1x1x128xf32>
    %94 = vector.shape_cast %93 : vector<1x1x128xf32> to vector<1x128xf32>
    %cst_98 = arith.constant 0.000000e+00 : bf16
    %95 = vector.broadcast %cst_98 : bf16 to vector<2x4x128xbf16>
    %c0_99 = arith.constant 0 : index
    %c0_100 = arith.constant 0 : index
    %c0_101 = arith.constant 0 : index
    %96 = vector.load %arg11[%c0_99, %c0_100, %c0_101] : memref<2x16x384xbf16, #tpu.memory_space<vmem>>, vector<2x4x128xbf16>
    tpu.vector_store %arg11[%c0_99, %c0_100, %c0_101], %95 {strides = array<i32>} : memref<2x16x384xbf16, #tpu.memory_space<vmem>>, vector<2x4x128xbf16>,
    %97 = vector.extract_strided_slice %90 {offsets = [0, 0, 0], sizes = [2, 12, 128], strides = [1, 1, 1]} : vector<2x16x128xbf16> to vector<2x12x128xbf16>
    %c0_102 = arith.constant 0 : index
    %c4_103 = arith.constant 4 : index
    %c0_104 = arith.constant 0 : index
    %98 = vector.load %arg11[%c0_102, %c4_103, %c0_104] : memref<2x16x384xbf16, #tpu.memory_space<vmem>>, vector<2x12x128xbf16>
    tpu.vector_store %arg11[%c0_102, %c4_103, %c0_104], %97 {strides = array<i32>} : memref<2x16x384xbf16, #tpu.memory_space<vmem>>, vector<2x12x128xbf16>,
    %cst_105 = arith.constant 0.000000e+00 : bf16
    %99 = vector.broadcast %cst_105 : bf16 to vector<2x2x128xbf16>
    %c0_106 = arith.constant 0 : index
    %c0_107 = arith.constant 0 : index
    %c128_108 = arith.constant 128 : index
    %100 = vector.load %arg11[%c0_106, %c0_107, %c128_108] : memref<2x16x384xbf16, #tpu.memory_space<vmem>>, vector<2x2x128xbf16>
    tpu.vector_store %arg11[%c0_106, %c0_107, %c128_108], %99 {strides = array<i32>} : memref<2x16x384xbf16, #tpu.memory_space<vmem>>, vector<2x2x128xbf16>,
    %101 = vector.extract_strided_slice %90 {offsets = [0, 0, 0], sizes = [2, 14, 128], strides = [1, 1, 1]} : vector<2x16x128xbf16> to vector<2x14x128xbf16>
    %c0_109 = arith.constant 0 : index
    %c2_110 = arith.constant 2 : index
    %c128_111 = arith.constant 128 : index
    %102 = vector.load %arg11[%c0_109, %c2_110, %c128_111] : memref<2x16x384xbf16, #tpu.memory_space<vmem>>, vector<2x14x128xbf16>
    tpu.vector_store %arg11[%c0_109, %c2_110, %c128_111], %101 {strides = array<i32>} : memref<2x16x384xbf16, #tpu.memory_space<vmem>>, vector<2x14x128xbf16>,
    %c0_112 = arith.constant 0 : index
    %c0_113 = arith.constant 0 : index
    %c256_114 = arith.constant 256 : index
    %103 = vector.load %arg11[%c0_112, %c0_113, %c256_114] : memref<2x16x384xbf16, #tpu.memory_space<vmem>>, vector<2x16x128xbf16>
    tpu.vector_store %arg11[%c0_112, %c0_113, %c256_114], %90 {strides = array<i32>} : memref<2x16x384xbf16, #tpu.memory_space<vmem>>, vector<2x16x128xbf16>,
    %c0_115 = arith.constant 0 : index
    %c0_116 = arith.constant 0 : index
    %c0_117 = arith.constant 0 : index
    %104 = vector.load %arg11[%c0_115, %c0_116, %c0_117] : memref<2x16x384xbf16, #tpu.memory_space<vmem>>, vector<2x16x384xbf16>
    %105 = vector.shape_cast %104 : vector<2x16x384xbf16> to vector<32x384xbf16>
    %cst_118 = arith.constant dense<0.000000e+00> : vector<32x128xf32>
    %106 = tpu.matmul %105, %92, %cst_118 {dimension_numbers = #tpu.dot_dimension_numbers<[1], [0], [0], [1], [0, 0, 1, 1], [], []>} : vector<32x384xbf16>, vector<384x128xbf16>, vector<32x128xf32> -> vector<32x128xf32>
    %107 = vector.broadcast %94 : vector<1x128xf32> to vector<32x128xf32>
    %108 = arith.addf %106, %107 : vector<32x128xf32>
    %cst_119 = arith.constant 0.000000e+00 : f32
    %109 = vector.broadcast %cst_119 : f32 to vector<32x128xf32>
    %110 = arith.cmpf oge, %108, %109 : vector<32x128xf32>
    %cst_120 = arith.constant 9.99999974E-5 : f32
    %111 = vector.broadcast %cst_120 : f32 to vector<32x128xf32>
    %112 = arith.mulf %111, %108 : vector<32x128xf32>
    %113 = arith.select %110, %108, %112 : vector<32x128xi1>, vector<32x128xf32>
    %114 = vector.shape_cast %64 : vector<2x16x128xf32> to vector<32x128xf32>
    %115 = arith.addf %114, %113 : vector<32x128xf32>
    %cst_121 = arith.constant 0.000000e+00 : f32
    %116 = vector.broadcast %cst_121 : f32 to vector<32x128xf32>
    %117 = arith.cmpf oge, %115, %116 : vector<32x128xf32>
    %cst_122 = arith.constant 0.00999999977 : f32
    %118 = vector.broadcast %cst_122 : f32 to vector<32x128xf32>
    %119 = arith.mulf %118, %115 : vector<32x128xf32>
    %120 = arith.select %117, %115, %119 : vector<32x128xi1>, vector<32x128xf32>
    %121 = vector.shape_cast %120 : vector<32x128xf32> to vector<2x16x128xf32>
    %122 = arith.truncf %121 : vector<2x16x128xf32> to vector<2x16x128xbf16>
    %c2_123 = arith.constant 2 : index
    %c0_124 = arith.constant 0 : index
    %c0_125 = arith.constant 0 : index
    %123 = vector.load %arg2[%c2_123, %c0_124, %c0_125] : memref<3x384x128xbf16, #tpu.memory_space<vmem>>, vector<1x384x128xbf16>
    %124 = vector.shape_cast %123 : vector<1x384x128xbf16> to vector<384x128xbf16>
    %c2_126 = arith.constant 2 : index
    %c0_127 = arith.constant 0 : index
    %c0_128 = arith.constant 0 : index
    %125 = vector.load %arg3[%c2_126, %c0_127, %c0_128] : memref<3x1x128xf32, #tpu.memory_space<vmem>>, vector<1x1x128xf32>
    %126 = vector.shape_cast %125 : vector<1x1x128xf32> to vector<1x128xf32>
    %cst_129 = arith.constant 0.000000e+00 : bf16
    %127 = vector.broadcast %cst_129 : bf16 to vector<2x8x128xbf16>
    %c0_130 = arith.constant 0 : index
    %c0_131 = arith.constant 0 : index
    %c0_132 = arith.constant 0 : index
    %128 = vector.load %arg11[%c0_130, %c0_131, %c0_132] : memref<2x16x384xbf16, #tpu.memory_space<vmem>>, vector<2x8x128xbf16>
    tpu.vector_store %arg11[%c0_130, %c0_131, %c0_132], %127 {strides = array<i32>} : memref<2x16x384xbf16, #tpu.memory_space<vmem>>, vector<2x8x128xbf16>,
    %129 = vector.extract_strided_slice %122 {offsets = [0, 0, 0], sizes = [2, 8, 128], strides = [1, 1, 1]} : vector<2x16x128xbf16> to vector<2x8x128xbf16>
    %c0_133 = arith.constant 0 : index
    %c8 = arith.constant 8 : index
    %c0_134 = arith.constant 0 : index
    %130 = vector.load %arg11[%c0_133, %c8, %c0_134] : memref<2x16x384xbf16, #tpu.memory_space<vmem>>, vector<2x8x128xbf16>
    tpu.vector_store %arg11[%c0_133, %c8, %c0_134], %129 {strides = array<i32>} : memref<2x16x384xbf16, #tpu.memory_space<vmem>>, vector<2x8x128xbf16>,
    %cst_135 = arith.constant 0.000000e+00 : bf16
    %131 = vector.broadcast %cst_135 : bf16 to vector<2x4x128xbf16>
    %c0_136 = arith.constant 0 : index
    %c0_137 = arith.constant 0 : index
    %c128_138 = arith.constant 128 : index
    %132 = vector.load %arg11[%c0_136, %c0_137, %c128_138] : memref<2x16x384xbf16, #tpu.memory_space<vmem>>, vector<2x4x128xbf16>
    tpu.vector_store %arg11[%c0_136, %c0_137, %c128_138], %131 {strides = array<i32>} : memref<2x16x384xbf16, #tpu.memory_space<vmem>>, vector<2x4x128xbf16>,
    %133 = vector.extract_strided_slice %122 {offsets = [0, 0, 0], sizes = [2, 12, 128], strides = [1, 1, 1]} : vector<2x16x128xbf16> to vector<2x12x128xbf16>
    %c0_139 = arith.constant 0 : index
    %c4_140 = arith.constant 4 : index
    %c128_141 = arith.constant 128 : index
    %134 = vector.load %arg11[%c0_139, %c4_140, %c128_141] : memref<2x16x384xbf16, #tpu.memory_space<vmem>>, vector<2x12x128xbf16>
    tpu.vector_store %arg11[%c0_139, %c4_140, %c128_141], %133 {strides = array<i32>} : memref<2x16x384xbf16, #tpu.memory_space<vmem>>, vector<2x12x128xbf16>,
    %c0_142 = arith.constant 0 : index
    %c0_143 = arith.constant 0 : index
    %c256_144 = arith.constant 256 : index
    %135 = vector.load %arg11[%c0_142, %c0_143, %c256_144] : memref<2x16x384xbf16, #tpu.memory_space<vmem>>, vector<2x16x128xbf16>
    tpu.vector_store %arg11[%c0_142, %c0_143, %c256_144], %122 {strides = array<i32>} : memref<2x16x384xbf16, #tpu.memory_space<vmem>>, vector<2x16x128xbf16>,
    %c0_145 = arith.constant 0 : index
    %c0_146 = arith.constant 0 : index
    %c0_147 = arith.constant 0 : index
    %136 = vector.load %arg11[%c0_145, %c0_146, %c0_147] : memref<2x16x384xbf16, #tpu.memory_space<vmem>>, vector<2x16x384xbf16>
    %137 = vector.shape_cast %136 : vector<2x16x384xbf16> to vector<32x384xbf16>
    %cst_148 = arith.constant dense<0.000000e+00> : vector<32x128xf32>
    %138 = tpu.matmul %137, %124, %cst_148 {dimension_numbers = #tpu.dot_dimension_numbers<[1], [0], [0], [1], [0, 0, 1, 1], [], []>} : vector<32x384xbf16>, vector<384x128xbf16>, vector<32x128xf32> -> vector<32x128xf32>
    %139 = vector.broadcast %126 : vector<1x128xf32> to vector<32x128xf32>
    %140 = arith.addf %138, %139 : vector<32x128xf32>
    %cst_149 = arith.constant 0.000000e+00 : f32
    %141 = vector.broadcast %cst_149 : f32 to vector<32x128xf32>
    %142 = arith.cmpf oge, %140, %141 : vector<32x128xf32>
    %cst_150 = arith.constant 0.00999999977 : f32
    %143 = vector.broadcast %cst_150 : f32 to vector<32x128xf32>
    %144 = arith.mulf %143, %140 : vector<32x128xf32>
    %145 = arith.select %142, %140, %144 : vector<32x128xi1>, vector<32x128xf32>
    %146 = vector.shape_cast %145 : vector<32x128xf32> to vector<2x16x128xf32>
    %147 = arith.truncf %146 : vector<2x16x128xf32> to vector<2x16x128xbf16>
    %c2_151 = arith.constant 2 : index
    %c0_152 = arith.constant 0 : index
    %c0_153 = arith.constant 0 : index
    %148 = vector.load %arg4[%c2_151, %c0_152, %c0_153] : memref<3x384x128xbf16, #tpu.memory_space<vmem>>, vector<1x384x128xbf16>
    %149 = vector.shape_cast %148 : vector<1x384x128xbf16> to vector<384x128xbf16>
    %c2_154 = arith.constant 2 : index
    %c0_155 = arith.constant 0 : index
    %c0_156 = arith.constant 0 : index
    %150 = vector.load %arg5[%c2_154, %c0_155, %c0_156] : memref<3x1x128xf32, #tpu.memory_space<vmem>>, vector<1x1x128xf32>
    %151 = vector.shape_cast %150 : vector<1x1x128xf32> to vector<1x128xf32>
    %cst_157 = arith.constant 0.000000e+00 : bf16
    %152 = vector.broadcast %cst_157 : bf16 to vector<2x8x128xbf16>
    %c0_158 = arith.constant 0 : index
    %c0_159 = arith.constant 0 : index
    %c0_160 = arith.constant 0 : index
    %153 = vector.load %arg11[%c0_158, %c0_159, %c0_160] : memref<2x16x384xbf16, #tpu.memory_space<vmem>>, vector<2x8x128xbf16>
    tpu.vector_store %arg11[%c0_158, %c0_159, %c0_160], %152 {strides = array<i32>} : memref<2x16x384xbf16, #tpu.memory_space<vmem>>, vector<2x8x128xbf16>,
    %154 = vector.extract_strided_slice %147 {offsets = [0, 0, 0], sizes = [2, 8, 128], strides = [1, 1, 1]} : vector<2x16x128xbf16> to vector<2x8x128xbf16>
    %c0_161 = arith.constant 0 : index
    %c8_162 = arith.constant 8 : index
    %c0_163 = arith.constant 0 : index
    %155 = vector.load %arg11[%c0_161, %c8_162, %c0_163] : memref<2x16x384xbf16, #tpu.memory_space<vmem>>, vector<2x8x128xbf16>
    tpu.vector_store %arg11[%c0_161, %c8_162, %c0_163], %154 {strides = array<i32>} : memref<2x16x384xbf16, #tpu.memory_space<vmem>>, vector<2x8x128xbf16>,
    %cst_164 = arith.constant 0.000000e+00 : bf16
    %156 = vector.broadcast %cst_164 : bf16 to vector<2x4x128xbf16>
    %c0_165 = arith.constant 0 : index
    %c0_166 = arith.constant 0 : index
    %c128_167 = arith.constant 128 : index
    %157 = vector.load %arg11[%c0_165, %c0_166, %c128_167] : memref<2x16x384xbf16, #tpu.memory_space<vmem>>, vector<2x4x128xbf16>
    tpu.vector_store %arg11[%c0_165, %c0_166, %c128_167], %156 {strides = array<i32>} : memref<2x16x384xbf16, #tpu.memory_space<vmem>>, vector<2x4x128xbf16>,
    %158 = vector.extract_strided_slice %147 {offsets = [0, 0, 0], sizes = [2, 12, 128], strides = [1, 1, 1]} : vector<2x16x128xbf16> to vector<2x12x128xbf16>
    %c0_168 = arith.constant 0 : index
    %c4_169 = arith.constant 4 : index
    %c128_170 = arith.constant 128 : index
    %159 = vector.load %arg11[%c0_168, %c4_169, %c128_170] : memref<2x16x384xbf16, #tpu.memory_space<vmem>>, vector<2x12x128xbf16>
    tpu.vector_store %arg11[%c0_168, %c4_169, %c128_170], %158 {strides = array<i32>} : memref<2x16x384xbf16, #tpu.memory_space<vmem>>, vector<2x12x128xbf16>,
    %c0_171 = arith.constant 0 : index
    %c0_172 = arith.constant 0 : index
    %c256_173 = arith.constant 256 : index
    %160 = vector.load %arg11[%c0_171, %c0_172, %c256_173] : memref<2x16x384xbf16, #tpu.memory_space<vmem>>, vector<2x16x128xbf16>
    tpu.vector_store %arg11[%c0_171, %c0_172, %c256_173], %147 {strides = array<i32>} : memref<2x16x384xbf16, #tpu.memory_space<vmem>>, vector<2x16x128xbf16>,
    %c0_174 = arith.constant 0 : index
    %c0_175 = arith.constant 0 : index
    %c0_176 = arith.constant 0 : index
    %161 = vector.load %arg11[%c0_174, %c0_175, %c0_176] : memref<2x16x384xbf16, #tpu.memory_space<vmem>>, vector<2x16x384xbf16>
    %162 = vector.shape_cast %161 : vector<2x16x384xbf16> to vector<32x384xbf16>
    %cst_177 = arith.constant dense<0.000000e+00> : vector<32x128xf32>
    %163 = tpu.matmul %162, %149, %cst_177 {dimension_numbers = #tpu.dot_dimension_numbers<[1], [0], [0], [1], [0, 0, 1, 1], [], []>} : vector<32x384xbf16>, vector<384x128xbf16>, vector<32x128xf32> -> vector<32x128xf32>
    %164 = vector.broadcast %151 : vector<1x128xf32> to vector<32x128xf32>
    %165 = arith.addf %163, %164 : vector<32x128xf32>
    %cst_178 = arith.constant 0.000000e+00 : f32
    %166 = vector.broadcast %cst_178 : f32 to vector<32x128xf32>
    %167 = arith.cmpf oge, %165, %166 : vector<32x128xf32>
    %cst_179 = arith.constant 9.99999974E-5 : f32
    %168 = vector.broadcast %cst_179 : f32 to vector<32x128xf32>
    %169 = arith.mulf %168, %165 : vector<32x128xf32>
    %170 = arith.select %167, %165, %169 : vector<32x128xi1>, vector<32x128xf32>
    %171 = vector.shape_cast %122 : vector<2x16x128xbf16> to vector<32x128xbf16>
    %c2_180 = arith.constant 2 : index
    %c0_181 = arith.constant 0 : index
    %c0_182 = arith.constant 0 : index
    %172 = vector.load %arg6[%c2_180, %c0_181, %c0_182] : memref<3x128x128xbf16, #tpu.memory_space<vmem>>, vector<1x128x128xbf16>
    %173 = vector.shape_cast %172 : vector<1x128x128xbf16> to vector<128x128xbf16>
    %cst_183 = arith.constant dense<0.000000e+00> : vector<32x128xf32>
    %174 = tpu.matmul %171, %173, %cst_183 {dimension_numbers = #tpu.dot_dimension_numbers<[1], [0], [0], [1], [0, 0, 1, 1], [], []>} : vector<32x128xbf16>, vector<128x128xbf16>, vector<32x128xf32> -> vector<32x128xf32>
    %c2_184 = arith.constant 2 : index
    %c0_185 = arith.constant 0 : index
    %c0_186 = arith.constant 0 : index
    %175 = vector.load %arg7[%c2_184, %c0_185, %c0_186] : memref<3x1x128xf32, #tpu.memory_space<vmem>>, vector<1x1x128xf32>
    %176 = vector.shape_cast %175 : vector<1x1x128xf32> to vector<1x128xf32>
    %177 = vector.broadcast %176 : vector<1x128xf32> to vector<32x128xf32>
    %178 = arith.addf %174, %177 : vector<32x128xf32>
    %179 = arith.addf %178, %170 : vector<32x128xf32>
    %cst_187 = arith.constant 0.000000e+00 : f32
    %180 = vector.broadcast %cst_187 : f32 to vector<32x128xf32>
    %181 = arith.cmpf oge, %179, %180 : vector<32x128xf32>
    %cst_188 = arith.constant 0.00999999977 : f32
    %182 = vector.broadcast %cst_188 : f32 to vector<32x128xf32>
    %183 = arith.mulf %182, %179 : vector<32x128xf32>
    %184 = arith.select %181, %179, %183 : vector<32x128xi1>, vector<32x128xf32>
    %185 = vector.shape_cast %184 : vector<32x128xf32> to vector<2x16x128xf32>
    %cst_189 = arith.constant dense<0xFF800000> : vector<2x128xf32>
    %186 = vector.multi_reduction <maximumf>, %185, %cst_189 [1] : vector<2x16x128xf32> to vector<2x128xf32>
    %187 = arith.truncf %186 : vector<2x128xf32> to vector<2x128xbf16>
    %c0_190 = arith.constant 0 : index
    %c0_191 = arith.constant 0 : index
    %188 = vector.load %arg8[%c0_190, %c0_191] : memref<128x128xbf16, #tpu.memory_space<vmem>>, vector<128x128xbf16>
    %cst_192 = arith.constant dense<0.000000e+00> : vector<2x128xf32>
    %189 = tpu.matmul %187, %188, %cst_192 {dimension_numbers = #tpu.dot_dimension_numbers<[1], [0], [0], [1], [0, 0, 1, 1], [], []>} : vector<2x128xbf16>, vector<128x128xbf16>, vector<2x128xf32> -> vector<2x128xf32>
    %c0_193 = arith.constant 0 : index
    %c0_194 = arith.constant 0 : index
    %190 = vector.load %arg9[%c0_193, %c0_194] : memref<1x128xf32, #tpu.memory_space<vmem>>, vector<1x128xf32>
    %191 = vector.broadcast %190 : vector<1x128xf32> to vector<2x128xf32>
    %192 = arith.addf %189, %191 : vector<2x128xf32>
    %193 = arith.mulf %192, %192 : vector<2x128xf32>
    %cst_195 = arith.constant dense<0.000000e+00> : vector<2xf32>
    %194 = vector.multi_reduction <add>, %193, %cst_195 [1] : vector<2x128xf32> to vector<2xf32>
    %195 = vector.shape_cast %194 : vector<2xf32> to vector<2x1xf32>
    %cst_196 = arith.constant 1.000000e-24 : f32
    %196 = vector.broadcast %cst_196 : f32 to vector<2x1xf32>
    %197 = arith.maximumf %195, %196 : vector<2x1xf32>
    %198 = math.rsqrt %197 : vector<2x1xf32>
    %199 = vector.broadcast %198 : vector<2x1xf32> to vector<2x128xf32>
    %200 = arith.mulf %192, %199 : vector<2x128xf32>
    %c0_197 = arith.constant 0 : index
    %c0_198 = arith.constant 0 : index
    %201 = vector.load %arg10[%c0_197, %c0_198] : memref<2x128xf32, #tpu.memory_space<vmem>>, vector<2x128xf32>
    tpu.vector_store %arg10[%c0_197, %c0_198], %200 {strides = array<i32>} : memref<2x128xf32, #tpu.memory_space<vmem>>, vector<2x128xf32>,
    return
  }
  func.func @transform_0(%arg0: i32) -> (i32, i32, i32) {
    %c0_i32 = arith.constant 0 : i32
    %c0_i32_0 = arith.constant 0 : i32
    %c0_i32_1 = arith.constant 0 : i32
    return %arg0, %c0_i32, %c0_i32_0 : i32, i32, i32
  }
  func.func @transform_1(%arg0: i32) -> (i32, i32, i32) {
    %c0_i32 = arith.constant 0 : i32
    %c0_i32_0 = arith.constant 0 : i32
    %c0_i32_1 = arith.constant 0 : i32
    %c0_i32_2 = arith.constant 0 : i32
    return %c0_i32, %c0_i32_0, %c0_i32_1 : i32, i32, i32
  }
  func.func @transform_2(%arg0: i32) -> (i32, i32, i32) {
    %c0_i32 = arith.constant 0 : i32
    %c0_i32_0 = arith.constant 0 : i32
    %c0_i32_1 = arith.constant 0 : i32
    %c0_i32_2 = arith.constant 0 : i32
    return %c0_i32, %c0_i32_0, %c0_i32_1 : i32, i32, i32
  }
  func.func @transform_3(%arg0: i32) -> (i32, i32, i32) {
    %c0_i32 = arith.constant 0 : i32
    %c0_i32_0 = arith.constant 0 : i32
    %c0_i32_1 = arith.constant 0 : i32
    %c0_i32_2 = arith.constant 0 : i32
    return %c0_i32, %c0_i32_0, %c0_i32_1 : i32, i32, i32
  }
  func.func @transform_4(%arg0: i32) -> (i32, i32, i32) {
    %c0_i32 = arith.constant 0 : i32
    %c0_i32_0 = arith.constant 0 : i32
    %c0_i32_1 = arith.constant 0 : i32
    %c0_i32_2 = arith.constant 0 : i32
    return %c0_i32, %c0_i32_0, %c0_i32_1 : i32, i32, i32
  }
  func.func @transform_5(%arg0: i32) -> (i32, i32, i32) {
    %c0_i32 = arith.constant 0 : i32
    %c0_i32_0 = arith.constant 0 : i32
    %c0_i32_1 = arith.constant 0 : i32
    %c0_i32_2 = arith.constant 0 : i32
    return %c0_i32, %c0_i32_0, %c0_i32_1 : i32, i32, i32
  }
  func.func @transform_6(%arg0: i32) -> (i32, i32, i32) {
    %c0_i32 = arith.constant 0 : i32
    %c0_i32_0 = arith.constant 0 : i32
    %c0_i32_1 = arith.constant 0 : i32
    %c0_i32_2 = arith.constant 0 : i32
    return %c0_i32, %c0_i32_0, %c0_i32_1 : i32, i32, i32
  }
  func.func @transform_7(%arg0: i32) -> (i32, i32) {
    %c0_i32 = arith.constant 0 : i32
    %c0_i32_0 = arith.constant 0 : i32
    %c0_i32_1 = arith.constant 0 : i32
    return %c0_i32, %c0_i32_0 : i32, i32
  }
  func.func @transform_8(%arg0: i32) -> (i32, i32) {
    %c0_i32 = arith.constant 0 : i32
    %c0_i32_0 = arith.constant 0 : i32
    %c0_i32_1 = arith.constant 0 : i32
    return %c0_i32, %c0_i32_0 : i32, i32
  }
  func.func @transform_9(%arg0: i32) -> (i32, i32) {
    %c0_i32 = arith.constant 0 : i32
    %c0_i32_0 = arith.constant 0 : i32
    return %arg0, %c0_i32 : i32, i32
  }
}

</mosaic_0001>

<bundles_post_ra>
// kernel: _lambda_.1
= control target key start
LH: loop header
LB: loop body
LE: loop exit
PB: predicated region body
PF: predicated region fallthrough
CT: control target
= control target key end

     0   :  { %14 = vsyncpa [#allocation4], 0  ;;  %s3779_s0 = inlined_call_operand.vmem [shape: f32[2,16,128], index: 0, kind: input, shape index: {}]   ;;  %s3780_s1 = inlined_call_operand.hbm [shape: bf16[3,384,128], index: 1, kind: input, shape index: {}]   ;;  %s3781_s2 = inlined_call_operand.vmem [shape: f32[3,1,128], index: 2, kind: input, shape index: {}]   ;;  %s3782_s3 = inlined_call_operand.hbm [shape: bf16[3,384,128], index: 3, kind: input, shape index: {}]   ;;  %s3783_s4 = inlined_call_operand.vmem [shape: f32[3,1,128], index: 4, kind: input, shape index: {}]   ;;  %s3784_s5 = inlined_call_operand.hbm [shape: bf16[3,128,128], index: 5, kind: input, shape index: {}]   ;;  %s3785_s6 = inlined_call_operand.vmem [shape: f32[3,1,128], index: 6, kind: input, shape index: {}]   ;;  %s3786_s7 = inlined_call_operand.vmem [shape: bf16[128,128], index: 7, kind: input, shape index: {}]   ;;  %s3787_s8 = inlined_call_operand.vmem [shape: f32[1,128], index: 8, kind: input, shape index: {}]   ;;  %s3788_s9 = inlined_call_operand.hbm [shape: f32[2,128], index: 9, kind: output, shape index: {}]  }
   0x1   :  { %15 = vsyncpa [#allocation7], 0 }
   0x2   :  { %16 = vsyncpa [#allocation5], 0  ;;  %s3497_s30 = smov [#allocation6]   ;;  %s3498_s11 = smov [#allocation3]  }
   0x3   :  { %s38_s10 = sshll.u32 %s3497_s30, 4  ;;  %s24_s12 = sshll.u32 %s3498_s11, 4  ;;  %s39_s10 = int_to_ptr.vmem [resolvable:$true] %s38_s10  ;;  %s3556_s12 = int_to_ptr.vmem [resolvable:$true] %s24_s12 }
   0x4   :  { %s3403_s15 = scalar_lea.hbm %s3782_s3, 9216 }
   0x5   :  { %p3404_p0 = scmp.ne.s32.totalorder %s3782_s3, %s3403_s15  ;;  %p3407_p1 = scmp.lt.u32.totalorder %s3403_s15, %s3782_s3 }
   0x7   :  { %p3409_p2 = pnand %p3407_p1, %p3404_p0 }
   0x9   :  { %3412 = shalt.err (!%p3409_p2)
}
   0xa   :  { %s3413_s20 = scalar_lea.vmem %s39_s10, 9216  ;;  %p3418_p4 = scmp.lt.s32.totalorder %s39_s10, %s39_s10 }
   0xb   :  { %p3414_p3 = scmp.ne.s32.totalorder %s39_s10, %s3413_s20  ;;  %p3419_p5 = scmp.lt.s32.totalorder %s3413_s20, %s3413_s20 }
   0xd   :  { %p3420_p6 = por %p3419_p5, %p3418_p4 }
   0xf   :  { %p3421_p7 = pnand %p3420_p6, %p3414_p3 }
  0x11   :  { %3424 = shalt.err (!%p3421_p7)
}
  0x12   :  { %s3499_s21 = smov 64   ;;  %s3500_s22 = smov 4  }
  0x13   :  { %44 = dma.hbm_to_vmem [thread:$0]  %s3782_s3, 9216, %s39_s10, [#allocation7], %s3499_s21, %s3499_s21, %s3500_s22  }
  0x14   :  { %s3425_s27 = scalar_lea.hbm %s3780_s1, 9216 }
  0x15   :  { %p3426_p8 = scmp.ne.s32.totalorder %s3780_s1, %s3425_s27  ;;  %p3429_p9 = scmp.lt.u32.totalorder %s3425_s27, %s3780_s1 }
  0x17   :  { %p3431_p10 = pnand %p3429_p9, %p3426_p8 }
  0x19   :  { %3434 = shalt.err (!%p3431_p10)
}
  0x1a   :  { %s3435_s13 = scalar_lea.vmem %s3556_s12, 9216  ;;  %p3440_p12 = scmp.lt.s32.totalorder %s3556_s12, %s3556_s12 }
  0x1b   :  { %p3436_p11 = scmp.ne.s32.totalorder %s3556_s12, %s3435_s13  ;;  %p3441_p13 = scmp.lt.s32.totalorder %s3435_s13, %s3435_s13 }
  0x1d   :  { %p3442_p0 = por %p3441_p13, %p3440_p12 }
  0x1f   :  { %p3443_p1 = pnand %p3442_p0, %p3436_p11 }
  0x21   :  { %3446 = shalt.err (!%p3443_p1)
}
  0x22   :  { %30 = dma.hbm_to_vmem [thread:$0]  %s3780_s1, 9216, %s3556_s12, [#allocation4], %s3499_s21, %s3499_s21, %s3500_s22  }
  0x23   :  { %s3501_s14 = smov [#allocation8]   ;;  %s3447_s18 = scalar_lea.hbm %s3784_s5, 3072 }
  0x24   :  { %s52_s15 = sshll.u32 %s3501_s14, 4  ;;  %p3448_p2 = scmp.ne.s32.totalorder %s3784_s5, %s3447_s18  ;;  %s53_s15 = int_to_ptr.vmem [resolvable:$true] %s52_s15 }
  0x25   :  { %p3451_p3 = scmp.lt.u32.totalorder %s3447_s18, %s3784_s5 }
  0x27   :  { %p3453_p4 = pnand %p3451_p3, %p3448_p2 }
  0x29   :  { %3456 = shalt.err (!%p3453_p4)
}
  0x2a   :  { %s3457_s25 = scalar_lea.vmem %s53_s15, 3072  ;;  %p3462_p6 = scmp.lt.s32.totalorder %s53_s15, %s53_s15 }
  0x2b   :  { %p3458_p5 = scmp.ne.s32.totalorder %s53_s15, %s3457_s25  ;;  %p3463_p7 = scmp.lt.s32.totalorder %s3457_s25, %s3457_s25 }
  0x2d   :  { %p3464_p8 = por %p3463_p7, %p3462_p6 }
  0x2f   :  { %p3465_p9 = pnand %p3464_p8, %p3458_p5 }
  0x31   :  { %3468 = shalt.err (!%p3465_p9)
}
  0x32   :  { %58 = dma.hbm_to_vmem [thread:$0]  %s3784_s5, 3072, %s53_s15, [#allocation7], %s3499_s21, %s3499_s21, %s3500_s22  }
  0x33   :  { %3491 = dma.done.wait [#allocation4], 9216  }
  0x34   :  { %3492 = vsyncadd [#allocation4], 4294958080 }
  0x35   :  { %3493 = dma.done.wait [#allocation7], 12288  }
  0x36   :  { %3494 = vsyncadd [#allocation7], 4294955008  ;;  %v3502_v0 = vmov 0   ;;  %v3233_v1 = vld [vmem:[#allocation3 + $0x40] sm:$0xff]   ;;  %v3236_v4 = vld [vmem:[#allocation3 + $0x48] sm:$0xff]   ;;  %vm140_vm1 = vcmask 1040384  }
  0x37   :  { %130 = vst [vmem:[#allocation2] sm:$0x1] %v3502_v0  ;;  %131 = vst [vmem:[#allocation2 + $0x18] sm:$0x1] %v3502_v0  ;;  %v3234_v2 = vld [vmem:[#allocation3] sm:$0xff]   ;;  %2787 = vmatprep.subr.bf16.mxu0 %v3233_v1  ;;  %v3237_v5 = vld [vmem:[#allocation3 + $0x8] sm:$0xff]  }
  0x38   :  { %v3235_v3 = vld [vmem:[#allocation3 + $0x80] sm:$0xff]   ;;  %2788 = vmatpush3.bf16.msra.mxu0 %v3234_v2  ;;  %v3238_v6 = vld [vmem:[#allocation3 + $0x88] sm:$0xff]   ;;  %v3239_v7 = vld [vmem:[#allocation3 + $0x50] sm:$0xff]   ;;  %vm141_vm0 = vsmask.f32 256  ;;  %vm165_vm4 = vcmask 1047552  }
  0x39   :  { %3044 = vmatprep.subr.bf16.mxu1 %v3235_v3  ;;  %2789 = vmatprep.subr.bf16.mxu0 %v3236_v4  ;;  %v3240_v8 = vld [vmem:[#allocation3 + $0x10] sm:$0xff]   ;;  %v3242_v10 = vld [vmem:[#allocation3 + $0x58] sm:$0xff]   ;;  %v3245_v13 = vld [vmem:[#allocation3 + $0x60] sm:$0xff]   ;;  %vm166_vm3 = vsmask.f32 7938  ;;  %s3505_s14 = smov [#allocation9]  }
  0x3a   :  { %3045 = vmatpush3.bf16.msra.mxu1 %v3235_v3  ;;  %v3241_v9 = vld [vmem:[#allocation3 + $0x90] sm:$0xff]   ;;  %v3243_v11 = vld [vmem:[#allocation3 + $0x18] sm:$0xff]   ;;  %v3247_v14 = vld [vmem:[#allocation3 + $0xa0] sm:$0xff]   ;;  %s2595_s15 = sshll.u32 %s3505_s14, 4  ;;  %s2596_s15 = int_to_ptr.vmem [resolvable:$true] %s2595_s15 }
  0x3b   :  { %3046 = vmatprep.subr.bf16.mxu1 %v3238_v6  ;;  %v3244_v12 = vld [vmem:[#allocation3 + $0x98] sm:$0xff]   ;;  %v3246_v15 = vld [vmem:[#allocation3 + $0x20] sm:$0xff]   ;;  %v3248_v16 = vld [vmem:[#allocation3 + $0x68] sm:$0xff]   ;;  %s3469_s16 = scalar_lea.vmem %s2596_s15, 32  ;;  %p3474_p11 = scmp.lt.s32.totalorder %s2596_s15, %s2596_s15 }
  0x3c   :  { %2790 = vmatpush3.bf16.msra.mxu0 %v3237_v5  ;;  %vm3610_vm2 = vmand %vm140_vm1, %vm141_vm0  ;;  %v3250_v18 = vld [vmem:[#allocation3 + $0xa8] sm:$0xff]   ;;  %v3251_v20 = vld [vmem:[#allocation3 + $0x70] sm:$0xff]   ;;  %p3470_p10 = scmp.ne.s32.totalorder %s2596_s15, %s3469_s16  ;;  %p3475_p12 = scmp.lt.s32.totalorder %s3469_s16, %s3469_s16 }
  0x3d   :  { %2791 = vmatprep.subr.bf16.mxu0 %v3239_v7  ;;  %v3249_v19 = vld [vmem:[#allocation3 + $0x28] sm:$0xff]   ;;  %v3252_v21 = vld [vmem:[#allocation3 + $0x30] sm:$0xff]   ;;  %v3254_v23 = vld [vmem:[#allocation3 + $0x78] sm:$0xff]  }
  0x3e   :  { %3047 = vmatpush3.bf16.msra.mxu1 %v3238_v6  ;;  %v3253_v22 = vld [vmem:[#allocation3 + $0xb0] sm:$0xff]   ;;  %v76_v25 = vld [vmem:[%s3779_s0 + $0x8] sm:$0xff]  ;;  %v77_v29 = vld [vmem:[%s3779_s0 + $0x10] sm:$0xff]  ;;  %p3476_p13 = por %p3475_p12, %p3474_p11 }
  0x3f   :  { %3048 = vmatprep.subr.bf16.mxu1 %v3241_v9  ;;  %v75_v24 = vld [vmem:[%s3779_s0] sm:$0xff]  ;;  %v143_v26 = vld [vmem:[#allocation2 + $0x8] sm:$0x1]  ;;  %v78_v30 = vld [vmem:[%s3779_s0 + $0x18] sm:$0xff] }
  0x40   :  { %2792 = vmatpush3.bf16.msra.mxu0 %v3240_v8  ;;  %v3620_v27 = vpack.c.bf16 %v76_v25, %v75_v24  ;;  %v144_v28 = vsel %vm3610_vm2, 0, %v143_v26  ;;  %v146_v31 = vld [vmem:[#allocation2 + $0x20] sm:$0x1]  ;;  %v3256_v32 = vld [vmem:[#allocation3 + $0xb8] sm:$0xff]   ;;  %v3630_v33 = vpack.c.bf16 %v78_v30, %v77_v29  ;;  %v3257_v42 = vld [vmem:[#allocation6 + $0x40] sm:$0xff]   ;;  %p3477_p0 = pnand %p3476_p13, %p3470_p10 }
  0x41   :  { %2793 = vmatprep.subr.bf16.mxu0 %v3242_v10  ;;  %145 = vst [vmem:[#allocation2 + $0x8] sm:$0x1] %v144_v28  ;;  %v147_v34 = vsel %vm3610_vm2, 0, %v146_v31  ;;  %v3255_v35 = vld [vmem:[#allocation3 + $0x38] sm:$0xff]   ;;  %vm3643_vm5 = vmand %vm165_vm4, %vm166_vm3  ;;  %v3259_v46 = vld [vmem:[#allocation6 + $0x80] sm:$0xff]  }
  0x42   :  { %3049 = vmatpush3.bf16.msra.mxu1 %v3241_v9  ;;  %v134_v36 = vrot.slane %v3620_v27, 7  ;;  %v150_v37 = vshrl.u32 %v3620_v27, 16  ;;  %v153_v38 = vshll.u32 %v3620_v27, 16  ;;  %3060 = vmatprep.mubr.bf16.mxu1 %v3620_v27  ;;  %148 = vst [vmem:[#allocation2 + $0x20] sm:$0x1] %v147_v34  ;;  %v135_v39 = vrot.slane %v3630_v33, 7 }
  0x43   :  { %3050 = vmatprep.subr.bf16.mxu1 %v3244_v12  ;;  %v157_v40 = vshrl.u32 %v3630_v33, 16  ;;  %v160_v41 = vshll.u32 %v3630_v33, 16  ;;  %v3258_v49 = vld [vmem:[#allocation6] sm:$0xff]   ;;  %v3262_v60 = vld [vmem:[#allocation6 + $0x88] sm:$0xff]   ;;  %v3265_v63 = vld [vmem:[#allocation6 + $0x90] sm:$0xff]  }
  0x44   :  { %2794 = vmatpush3.bf16.msra.mxu0 %v3243_v11  ;;  %138 = vst [vmem:[#allocation2] sm:$0xfe] %v134_v36  ;;  %v152_v43 = vrot.slane %v150_v37, 7  ;;  %139 = vst [vmem:[#allocation2 + $0x18] sm:$0xfe] %v135_v39  ;;  %v3260_v61 = vld [vmem:[#allocation6 + $0x48] sm:$0xff]  }
  0x45   :  { %2795 = vmatprep.subr.bf16.mxu0 %v3245_v13  ;;  %v159_v45 = vrot.slane %v157_v40, 7  ;;  %v3261_v62 = vld [vmem:[#allocation6 + $0x8] sm:$0xff]   ;;  %v3263_v1 = vld [vmem:[#allocation6 + $0x50] sm:$0xff]   ;;  %v3268_v3 = vld [vmem:[#allocation6 + $0x98] sm:$0xff]  }
  0x46   :  { %3051 = vmatpush3.bf16.msra.mxu1 %v3244_v12  ;;  %v155_v47 = vor.u32 %v153_v38, %v152_v43  ;;  %v3264_v2 = vld [vmem:[#allocation6 + $0x10] sm:$0xff]   ;;  %v3266_v4 = vld [vmem:[#allocation6 + $0x58] sm:$0xff]   ;;  %v3271_v6 = vld [vmem:[#allocation6 + $0xa0] sm:$0xff]  }
  0x47   :  { %3052 = vmatprep.subr.bf16.mxu1 %v3247_v14  ;;  %v162_v48 = vor.u32 %v160_v41, %v159_v45  ;;  %v3267_v5 = vld [vmem:[#allocation6 + $0x18] sm:$0xff]   ;;  %v3269_v7 = vld [vmem:[#allocation6 + $0x60] sm:$0xff]   ;;  %v3274_v9 = vld [vmem:[#allocation6 + $0xa8] sm:$0xff]  }
  0x48   :  { %2796 = vmatpush3.bf16.msra.mxu0 %v3246_v15  ;;  %v168_v50 = vld [vmem:[#allocation2 + $0x8] sm:$0xff]  ;;  %v3270_v8 = vld [vmem:[#allocation6 + $0x20] sm:$0xff]   ;;  %v3272_v10 = vld [vmem:[#allocation6 + $0x68] sm:$0xff]  }
  0x49   :  { %2797 = vmatprep.subr.bf16.mxu0 %v3248_v16  ;;  %v169_v51 = vsel %vm3643_vm5, %v155_v47, %v168_v50  ;;  %v171_v52 = vld [vmem:[#allocation2 + $0x20] sm:$0xff]  ;;  %v3273_v11 = vld [vmem:[#allocation6 + $0x28] sm:$0xff]   ;;  %v3280_v15 = vld [vmem:[#allocation6 + $0xb8] sm:$0xff]  }
  0x4a   :  { %3053 = vmatpush3.bf16.msra.mxu1 %v3247_v14  ;;  %170 = vst [vmem:[#allocation2 + $0x8] sm:$0xff] %v169_v51  ;;  %364 = vmatprep.mubr.bf16.mxu0 %v169_v51  ;;  %v172_v53 = vsel %vm3643_vm5, %v162_v48, %v171_v52  ;;  %v3277_v12 = vld [vmem:[#allocation6 + $0xb0] sm:$0xff]   ;;  %v3278_v16 = vld [vmem:[#allocation6 + $0x78] sm:$0xff]   ;;  %v3286_v44 = vld [vmem:[#allocation8 + $0x28] sm:$0xff]  }
  0x4b   :  { %3054 = vmatprep.subr.bf16.mxu1 %v3250_v18  ;;  %v176_v54 = vld [vmem:[#allocation2] sm:$0xff]  ;;  %173 = vst [vmem:[#allocation2 + $0x20] sm:$0xff] %v172_v53  ;;  %v179_v55 = vld [vmem:[#allocation2 + $0x18] sm:$0xff]  ;;  %v3279_v17 = vld [vmem:[#allocation6 + $0x38] sm:$0xff]  }
  0x4c   :  { %2798 = vmatpush3.bf16.msra.mxu0 %v3249_v19  ;;  %493 = vst [vmem:[#allocation2] sm:$0x1] %v3502_v0  ;;  %494 = vst [vmem:[#allocation2 + $0x18] sm:$0x1] %v3502_v0  ;;  %v3275_v13 = vld [vmem:[#allocation6 + $0x70] sm:$0xff]  }
  0x4d   :  { %2799 = vmatprep.subr.bf16.mxu0 %v3251_v20  ;;  %v3276_v14 = vld [vmem:[#allocation6 + $0x30] sm:$0xff]  }
  0x4e   :  { %3055 = vmatpush3.bf16.msra.mxu1 %v3250_v18  ;;  %v3658_v18 = vld [vmem:[#allocation8] sm:$0xff]  }
  0x4f   :  { %3056 = vmatprep.subr.bf16.mxu1 %v3253_v22 }
  0x50   :  { %2800 = vmatpush3.bf16.msra.mxu0 %v3252_v21 }
  0x51   :  { %2801 = vmatprep.subr.bf16.mxu0 %v3254_v23  ;;  %v503_v56 = vld [vmem:[#allocation2 + $0x8] sm:$0x1]  ;;  %v2605_v23 = vld [vmem:[%s3781_s2] ss:$0 sm:$0xff] }
  0x52   :  { %3057 = vmatpush3.bf16.msra.mxu1 %v3253_v22  ;;  %v504_v57 = vsel %vm3610_vm2, 0, %v503_v56  ;;  %v506_v58 = vld [vmem:[#allocation2 + $0x20] sm:$0x1] }
  0x53   :  { %3058 = vmatprep.subr.bf16.mxu1 %v3256_v32  ;;  %505 = vst [vmem:[#allocation2 + $0x8] sm:$0x1] %v504_v57  ;;  %v507_v59 = vsel %vm3610_vm2, 0, %v506_v58 }
  0x54   :  { %2802 = vmatpush3.bf16.msra.mxu0 %v3255_v35  ;;  %508 = vst [vmem:[#allocation2 + $0x20] sm:$0x1] %v507_v59 }
  0x55   :  { %2825 = vmatprep.subr.bf16.mxu0 %v3257_v42 }
  0x56   :  { %3059 = vmatpush3.bf16.msra.mxu1 %v3256_v32 }
  0x57   :  { %3064 = vmatprep.subr.bf16.mxu1 %v3259_v46  ;;  %365 = vmatmul.mubr.bf16.vlgmr.msra.gmra.mrb[0].mxu0 %v176_v54 }
  0x58   :  { %372 = vmatprep.mubr.bf16.mxu0 %v172_v53  ;;  %2826 = vmatpush3.bf16.msra.mxu0 %v3258_v49 }
  0x59   :  { %3061 = vmatmul.mubr.bf16.vlgmr.msra.gmra.mrb[0].mxu1 %v3630_v33  ;;  %2827 = vmatprep.subr.bf16.mxu0 %v3260_v61 }
  0x5a   :  { %3065 = vmatpush3.bf16.msra.mxu1 %v3259_v46  ;;  %v525_v57 = vld [vmem:[#allocation2 + $0x8] sm:$0xff] }
  0x5b   :  { %3066 = vmatprep.subr.bf16.mxu1 %v3262_v60 }
  0x5c   :  { %2828 = vmatpush3.bf16.msra.mxu0 %v3261_v62 }
  0x5d   :  { %2829 = vmatprep.subr.bf16.mxu0 %v3263_v1 }
  0x5e   :  { %3067 = vmatpush3.bf16.msra.mxu1 %v3262_v60 }
  0x5f   :  { %373 = vmatmul.mubr.bf16.gmra.mrb[4].mxu0 %v179_v55  ;;  %3068 = vmatprep.subr.bf16.mxu1 %v3265_v63 }
  0x60   :  { %2830 = vmatpush3.bf16.msra.mxu0 %v3264_v2 }
  0x61   :  { %2831 = vmatprep.subr.bf16.mxu0 %v3266_v4 }
  0x62   :  { %3069 = vmatpush3.bf16.msra.mxu1 %v3265_v63 }
  0x63   :  { %3070 = vmatprep.subr.bf16.mxu1 %v3268_v3 }
  0x64   :  { %2832 = vmatpush3.bf16.msra.mxu0 %v3267_v5 }
  0x65   :  { %2833 = vmatprep.subr.bf16.mxu0 %v3269_v7  ;;  %v528_v7 = vld [vmem:[#allocation2 + $0x20] sm:$0xff] }
  0x66   :  { %3071 = vmatpush3.bf16.msra.mxu1 %v3268_v3  ;;  %v3282_v3 = vld [vmem:[#allocation8 + $0x8] sm:$0xff]  }
  0x67   :  { %3072 = vmatprep.subr.bf16.mxu1 %v3271_v6 }
  0x68   :  { %2834 = vmatpush3.bf16.msra.mxu0 %v3270_v8 }
  0x69   :  { %2835 = vmatprep.subr.bf16.mxu0 %v3272_v10 }
  0x6a   :  { %3073 = vmatpush3.bf16.msra.mxu1 %v3271_v6 }
  0x6b   :  { %3074 = vmatprep.subr.bf16.mxu1 %v3274_v9 }
  0x6c   :  { %2836 = vmatpush3.bf16.msra.mxu0 %v3273_v11  ;;  %v3284_v11 = vld [vmem:[#allocation8 + $0x18] sm:$0xff]  }
  0x6d   :  { %2837 = vmatprep.subr.bf16.mxu0 %v3275_v13  ;;  %v3285_v13 = vld [vmem:[#allocation8 + $0x20] sm:$0xff]  }
  0x6e   :  { %3075 = vmatpush3.bf16.msra.mxu1 %v3274_v9  ;;  %v3283_v9 = vld [vmem:[#allocation8 + $0x10] sm:$0xff]  }
  0x6f   :  { %3076 = vmatprep.subr.bf16.mxu1 %v3277_v12 }
  0x70   :  { %2838 = vmatpush3.bf16.msra.mxu0 %v3276_v14  ;;  %v3287_v14 = vld [vmem:[#allocation8 + $0x30] sm:$0xff]  }
  0x71   :  { %2839 = vmatprep.subr.bf16.mxu0 %v3278_v16  ;;  %v3289_v16 = vld [vmem:[#allocation3 + $0x140] sm:$0xff]  }
  0x72   :  { %3077 = vmatpush3.bf16.msra.mxu1 %v3277_v12 }
  0x73   :  { %3078 = vmatprep.subr.bf16.mxu1 %v3280_v15 }
  0x74   :  { %2840 = vmatpush3.bf16.msra.mxu0 %v3279_v17  ;;  %v3291_v17 = vld [vmem:[#allocation3 + $0xc0] sm:$0xff]  }
  0x75   :  { %3084 = vmatprep.subr.bf16.mxu0 %v3658_v18 }
  0x76   :  { %3079 = vmatpush3.bf16.msra.mxu1 %v3280_v15  ;;  %v3288_v15 = vld [vmem:[#allocation8 + $0x38] sm:$0xff]  }
 0x12a   :  { %v2803_v20 = vpop.f32.mrb[0].mxu0 }
 0x12b   :  { %v2804_v22 = vpop.f32.mrb[1].mxu0 }
 0x12c   :  { %v3062_v19 = vpop.f32.mrb[0].mxu1  ;;  %v2805_v25 = vadd.f32 %v2804_v22, %v2803_v20  ;;  %v2806_v26 = vpop.f32.mrb[2].mxu0  ;;  %v3295_v20 = vld [vmem:[#allocation3 + $0x150] sm:$0xff]   ;;  %v3298_v22 = vld [vmem:[#allocation3 + $0x158] sm:$0xff]  }
 0x12d   :  { %v415_v21 = vpop.f32.mrb[1].mxu1  ;;  %v2807_v29 = vpop.f32.mrb[3].mxu0 }
 0x12e   :  { %v3063_v24 = vpop.f32.mrb[2].mxu1  ;;  %v367_v30 = vadd.f32 %v2805_v25, %v2605_v23  ;;  %v2808_v31 = vadd.f32 %v2807_v29, %v2806_v26  ;;  %v3304_v25 = vld [vmem:[#allocation3 + $0x168] sm:$0xff]   ;;  %v3299_v26 = vld [vmem:[#allocation3 + $0x118] sm:$0xff]   ;;  %v3307_v29 = vld [vmem:[#allocation3 + $0x170] sm:$0xff]  }
 0x12f   :  { %v418_v28 = vpop.f32.mrb[3].mxu1 }
 0x130   :  { %v416_v32 = vadd.f32 %v415_v21, %v367_v30  ;;  %v370_v34 = vadd.f32 %v2808_v31, %v2605_v23  ;;  %v3294_v21 = vld [vmem:[#allocation3 + $0xc8] sm:$0xff]   ;;  %v3302_v30 = vld [vmem:[#allocation3 + $0x120] sm:$0xff]  }
 0x131   :  { %v3303_v31 = vld [vmem:[#allocation3 + $0xe0] sm:$0xff]  }
 0x132   :  { %v434_v35 = vmul.f32 0.01, %v416_v32  ;;  %v419_v36 = vadd.f32 %v418_v28, %v370_v34  ;;  %v2809_v37 = vpop.f32.mrb[4].mxu0  ;;  %vm430_vm6 = vcmp.ge.f32.partialorder %v416_v32, 0.0  ;;  %v3300_v28 = vld [vmem:[#allocation3 + $0xd8] sm:$0xff]   ;;  %v3305_v34 = vld [vmem:[#allocation3 + $0x128] sm:$0xff]  }
 0x133   :  { %v2810_v38 = vpop.f32.mrb[5].mxu0 }
 0x134   :  { %vm431_vm7 = vcmp.ge.f32.partialorder %v419_v36, 0.0  ;;  %v435_v39 = vmul.f32 0.01, %v419_v36  ;;  %v2811_v40 = vadd.f32 %v2810_v38, %v2809_v37  ;;  %v2812_v41 = vpop.f32.mrb[6].mxu0  ;;  %v438_v43 = vsel %vm430_vm6, %v416_v32, %v434_v35  ;;  %v3310_v32 = vld [vmem:[#allocation3 + $0x178] sm:$0xff]   ;;  %v3306_v35 = vld [vmem:[#allocation3 + $0xe8] sm:$0xff]  }
 0x135   :  { %v2813_v42 = vpop.f32.mrb[7].mxu0  ;;  %v3309_v37 = vld [vmem:[#allocation3 + $0xf0] sm:$0xff]   ;;  %v3311_v38 = vld [vmem:[#allocation3 + $0x138] sm:$0xff]  }
 0x136   :  { %v439_v45 = vsel %vm431_vm7, %v419_v36, %v435_v39  ;;  %v375_v46 = vadd.f32 %v2811_v40, %v2605_v23  ;;  %v2814_v47 = vadd.f32 %v2813_v42, %v2812_v41  ;;  %v3308_v36 = vld [vmem:[#allocation3 + $0x130] sm:$0xff]   ;;  %v3312_v39 = vld [vmem:[#allocation3 + $0xf8] sm:$0xff]   ;;  %v3313_v40 = vld [vmem:[#allocation6 + $0x100] sm:$0xff]  }
 0x137   :  { %v442_v48 = vpack.c.bf16 %v439_v45, %v438_v43 }
 0x138   :  { %v424_v49 = vadd.f32 %v3062_v19, %v375_v46  ;;  %v378_v50 = vadd.f32 %v2814_v47, %v2605_v23  ;;  %v3293_v19 = vld [vmem:[#allocation3 + $0x108] sm:$0xff]   ;;  %v3296_v23 = vld [vmem:[#allocation3 + $0x110] sm:$0xff]  }
 0x139   :  { %v497_v51 = vrot.slane %v442_v48, 7  ;;  %v510_v52 = vshrl.u32 %v442_v48, 16  ;;  %3080 = vmatprep.mubr.bf16.mxu1 %v442_v48  ;;  %v513_v56 = vshll.u32 %v442_v48, 16  ;;  %v2630_v47 = vld [vmem:[%s3783_s4] ss:$0 sm:$0xff] }
 0x13a   :  { %v436_v53 = vmul.f32 0.01, %v424_v49  ;;  %v427_v54 = vadd.f32 %v3063_v24, %v378_v50  ;;  %vm432_vm8 = vcmp.ge.f32.partialorder %v424_v49, 0.0  ;;  %v3297_v24 = vld [vmem:[#allocation3 + $0xd0] sm:$0xff]  }
 0x13b   :  { %501 = vst [vmem:[#allocation2] sm:$0xfe] %v497_v51  ;;  %v512_v55 = vrot.slane %v510_v52, 7 }
 0x13c   :  { %vm433_vm9 = vcmp.ge.f32.partialorder %v427_v54, 0.0  ;;  %v437_v58 = vmul.f32 0.01, %v427_v54  ;;  %v440_v60 = vsel %vm432_vm8, %v424_v49, %v436_v53 }
 0x13d   :  { %v515_v59 = vor.u32 %v513_v56, %v512_v55 }
 0x13e   :  { %v441_v61 = vsel %vm433_vm9, %v427_v54, %v437_v58 }
 0x13f   :  { %v526_v62 = vsel %vm3643_vm5, %v515_v59, %v525_v57  ;;  %v443_v63 = vpack.c.bf16 %v441_v61, %v440_v60 }
 0x140   :  { %527 = vst [vmem:[#allocation2 + $0x8] sm:$0xff] %v526_v62  ;;  %721 = vmatprep.mubr.bf16.mxu0 %v526_v62 }
 0x141   :  { %v498_v1 = vrot.slane %v443_v63, 7  ;;  %v517_v2 = vshrl.u32 %v443_v63, 16  ;;  %998 = vst [vmem:[#allocation2 + $0x8] sm:$0x1] %v3502_v0  ;;  %3081 = vmatmul.mubr.bf16.vlgmr.msra.gmra.mrb[4].mxu1 %v443_v63  ;;  %v520_v6 = vshll.u32 %v443_v63, 16 }
 0x142   :  { %v533_v4 = vld [vmem:[#allocation2] sm:$0xff] }
 0x143   :  { %502 = vst [vmem:[#allocation2 + $0x18] sm:$0xfe] %v498_v1  ;;  %v519_v5 = vrot.slane %v517_v2, 7  ;;  %722 = vmatmul.mubr.bf16.vlgmr.msra.gmra.mrb[8].mxu0 %v533_v4  ;;  %988 = vst [vmem:[#allocation2] sm:$0x3] %v3502_v0 }
 0x144   :  { %3085 = vmatpush3.bf16.msra.mxu0 %v3658_v18  ;;  %v3292_v18 = vld [vmem:[#allocation3 + $0x148] sm:$0xff]  }
 0x145   :  { %v522_v8 = vor.u32 %v520_v6, %v519_v5  ;;  %3086 = vmatprep.subr.bf16.mxu0 %v3282_v3  ;;  %v2655_v5 = vld [vmem:[%s3785_s6] ss:$0 sm:$0xff] }
 0x147   :  { %v529_v10 = vsel %vm3643_vm5, %v522_v8, %v528_v7 }
 0x148   :  { %530 = vst [vmem:[#allocation2 + $0x20] sm:$0xff] %v529_v10  ;;  %3087 = vmatpush3.bf16.msra.mxu0 %v3282_v3  ;;  %729 = vmatprep.mubr.bf16.mxu0 %v529_v10 }
 0x149   :  { %999 = vst [vmem:[#allocation2 + $0x20] sm:$0x1] %v3502_v0  ;;  %3088 = vmatprep.subr.bf16.mxu0 %v3283_v9 }
 0x14a   :  { %v536_v12 = vld [vmem:[#allocation2 + $0x18] sm:$0xff] }
 0x14b   :  { %730 = vmatmul.mubr.bf16.gmra.mrb[12].mxu0 %v536_v12  ;;  %989 = vst [vmem:[#allocation2 + $0x18] sm:$0x3] %v3502_v0 }
 0x14c   :  { %3089 = vmatpush3.bf16.msra.mxu0 %v3283_v9  ;;  %3100 = vmatprep.mubr.bf16.mxu0 %v3620_v27  ;;  %v3290_v27 = vld [vmem:[#allocation3 + $0x100] sm:$0xff]  }
 0x14d   :  { %3090 = vmatprep.subr.bf16.mxu0 %v3284_v11  ;;  %2873 = vmatprep.subr.bf16.mxu1 %v3290_v27 }
 0x14e   :  { %2874 = vmatpush3.bf16.msra.mxu1 %v3291_v17 }
 0x14f   :  { %2875 = vmatprep.subr.bf16.mxu1 %v3293_v19 }
 0x150   :  { %3091 = vmatpush3.bf16.msra.mxu0 %v3284_v11 }
 0x151   :  { %3092 = vmatprep.subr.bf16.mxu0 %v3285_v13 }
 0x152   :  { %2876 = vmatpush3.bf16.msra.mxu1 %v3294_v21 }
 0x153   :  { %2877 = vmatprep.subr.bf16.mxu1 %v3296_v23 }
 0x154   :  { %3093 = vmatpush3.bf16.msra.mxu0 %v3285_v13 }
 0x155   :  { %3094 = vmatprep.subr.bf16.mxu0 %v3286_v44 }
 0x156   :  { %2878 = vmatpush3.bf16.msra.mxu1 %v3297_v24 }
 0x157   :  { %2879 = vmatprep.subr.bf16.mxu1 %v3299_v26 }
 0x158   :  { %3095 = vmatpush3.bf16.msra.mxu0 %v3286_v44 }
 0x159   :  { %3096 = vmatprep.subr.bf16.mxu0 %v3287_v14 }
 0x15a   :  { %2880 = vmatpush3.bf16.msra.mxu1 %v3300_v28 }
 0x15b   :  { %2881 = vmatprep.subr.bf16.mxu1 %v3302_v30 }
 0x15c   :  { %3097 = vmatpush3.bf16.msra.mxu0 %v3287_v14 }
 0x15d   :  { %3098 = vmatprep.subr.bf16.mxu0 %v3288_v15 }
 0x15e   :  { %2882 = vmatpush3.bf16.msra.mxu1 %v3303_v31 }
 0x15f   :  { %2883 = vmatprep.subr.bf16.mxu1 %v3305_v34 }
 0x160   :  { %3099 = vmatpush3.bf16.msra.mxu0 %v3288_v15 }
 0x161   :  { %3104 = vmatprep.subr.bf16.mxu0 %v3289_v16 }
 0x162   :  { %2884 = vmatpush3.bf16.msra.mxu1 %v3306_v35 }
 0x163   :  { %3101 = vmatmul.mubr.bf16.vlgmr.msra.gmra.mrb[16].mxu0 %v3630_v33  ;;  %v3301_v33 = vld [vmem:[#allocation3 + $0x160] sm:$0xff]   ;;  %2885 = vmatprep.subr.bf16.mxu1 %v3308_v36 }
 0x164   :  { %3105 = vmatpush3.bf16.msra.mxu0 %v3289_v16 }
 0x165   :  { %3106 = vmatprep.subr.bf16.mxu0 %v3292_v18 }
 0x166   :  { %2886 = vmatpush3.bf16.msra.mxu1 %v3309_v37 }
 0x167   :  { %2887 = vmatprep.subr.bf16.mxu1 %v3311_v38 }
 0x168   :  { %3107 = vmatpush3.bf16.msra.mxu0 %v3292_v18 }
 0x169   :  { %3108 = vmatprep.subr.bf16.mxu0 %v3295_v20 }
 0x16a   :  { %2888 = vmatpush3.bf16.msra.mxu1 %v3312_v39 }
 0x16b   :  { %2911 = vmatprep.subr.bf16.mxu1 %v3313_v40  ;;  %v3314_v40 = vld [vmem:[#allocation6 + $0xc0] sm:$0xff]  }
 0x16c   :  { %3109 = vmatpush3.bf16.msra.mxu0 %v3295_v20 }
 0x16d   :  { %3110 = vmatprep.subr.bf16.mxu0 %v3298_v22 }
 0x170   :  { %3111 = vmatpush3.bf16.msra.mxu0 %v3298_v22 }
 0x171   :  { %3112 = vmatprep.subr.bf16.mxu0 %v3301_v33 }
 0x174   :  { %3113 = vmatpush3.bf16.msra.mxu0 %v3301_v33 }
 0x175   :  { %3114 = vmatprep.subr.bf16.mxu0 %v3304_v25 }
 0x178   :  { %3115 = vmatpush3.bf16.msra.mxu0 %v3304_v25 }
 0x179   :  { %3116 = vmatprep.subr.bf16.mxu0 %v3307_v29 }
 0x17c   :  { %3117 = vmatpush3.bf16.msra.mxu0 %v3307_v29 }
 0x17d   :  { %3118 = vmatprep.subr.bf16.mxu0 %v3310_v32 }
 0x180   :  { %3119 = vmatpush3.bf16.msra.mxu0 %v3310_v32 }
 0x214   :  { %v3082_v41 = vpop.f32.mrb[4].mxu1 }
 0x215   :  { %v772_v42 = vpop.f32.mrb[5].mxu1 }
 0x216   :  { %v2841_v43 = vpop.f32.mrb[8].mxu0  ;;  %v3083_v45 = vpop.f32.mrb[6].mxu1 }
 0x217   :  { %v2842_v46 = vpop.f32.mrb[9].mxu0  ;;  %v775_v48 = vpop.f32.mrb[7].mxu1 }
 0x218   :  { %v2843_v49 = vadd.f32 %v2842_v46, %v2841_v43  ;;  %v2844_v50 = vpop.f32.mrb[10].mxu0  ;;  %v3317_v43 = vld [vmem:[#allocation6 + $0x140] sm:$0xff]   ;;  %v3316_v46 = vld [vmem:[#allocation6 + $0xc8] sm:$0xff]  }
 0x219   :  { %v2845_v51 = vpop.f32.mrb[11].mxu0  ;;  %3124 = vmatprep.subr.bf16.mxu0 %v3317_v43 }
 0x21a   :  { %v724_v52 = vadd.f32 %v2843_v49, %v2630_v47  ;;  %v2846_v53 = vadd.f32 %v2845_v51, %v2844_v50  ;;  %v3318_v49 = vld [vmem:[#allocation6 + $0x110] sm:$0xff]   ;;  %v3326_v51 = vld [vmem:[#allocation6 + $0x158] sm:$0xff]  }
 0x21b   :  { %v3319_v50 = vld [vmem:[#allocation6 + $0xd0] sm:$0xff]  }
 0x21c   :  { %v773_v54 = vadd.f32 %v772_v42, %v724_v52  ;;  %v727_v55 = vadd.f32 %v2846_v53, %v2630_v47  ;;  %v3321_v52 = vld [vmem:[#allocation6 + $0x118] sm:$0xff]  }
 0x21d   :  { %v3322_v53 = vld [vmem:[#allocation6 + $0xd8] sm:$0xff]  }
 0x21e   :  { %v776_v56 = vadd.f32 %v775_v48, %v727_v55  ;;  %v2847_v57 = vpop.f32.mrb[12].mxu0  ;;  %v791_v6 = vmul.f32 0.0001, %v773_v54  ;;  %vm787_vm11 = vcmp.ge.f32.partialorder %v773_v54, 0.0  ;;  %v3323_v48 = vld [vmem:[#allocation6 + $0x150] sm:$0xff]   ;;  %v3324_v55 = vld [vmem:[#allocation6 + $0x120] sm:$0xff]  }
 0x21f   :  { %v2848_v58 = vpop.f32.mrb[13].mxu0 }
 0x220   :  { %v2849_v59 = vadd.f32 %v2848_v58, %v2847_v57  ;;  %v2850_v60 = vpop.f32.mrb[14].mxu0  ;;  %v792_v9 = vmul.f32 0.0001, %v776_v56  ;;  %vm788_vm13 = vcmp.ge.f32.partialorder %v776_v56, 0.0  ;;  %v795_v15 = vsel %vm787_vm11, %v773_v54, %v791_v6  ;;  %v3329_v54 = vld [vmem:[#allocation6 + $0x160] sm:$0xff]   ;;  %v3332_v57 = vld [vmem:[#allocation6 + $0x168] sm:$0xff]  }
 0x221   :  { %v2851_v61 = vpop.f32.mrb[15].mxu0  ;;  %v3327_v58 = vld [vmem:[#allocation6 + $0x128] sm:$0xff]  }
 0x222   :  { %v732_v62 = vadd.f32 %v2849_v59, %v2630_v47  ;;  %v2852_v63 = vadd.f32 %v2851_v61, %v2850_v60  ;;  %v796_v22 = vsel %vm788_vm13, %v776_v56, %v792_v9  ;;  %v3325_v56 = vld [vmem:[#allocation6 + $0xe0] sm:$0xff]   ;;  %v3328_v59 = vld [vmem:[#allocation6 + $0xe8] sm:$0xff]   ;;  %v3335_v60 = vld [vmem:[#allocation6 + $0x170] sm:$0xff]  }
 0x223   :  { %v3330_v61 = vld [vmem:[#allocation6 + $0x130] sm:$0xff]  }
 0x224   :  { %v781_v1 = vadd.f32 %v3082_v41, %v732_v62  ;;  %v735_v2 = vadd.f32 %v2852_v63, %v2630_v47  ;;  %v3320_v47 = vld [vmem:[#allocation6 + $0x148] sm:$0xff]   ;;  %v3331_v62 = vld [vmem:[#allocation6 + $0xf0] sm:$0xff]   ;;  %v3336_v63 = vld [vmem:[#allocation6 + $0x178] sm:$0xff]  }
 0x226   :  { %v784_v3 = vadd.f32 %v3083_v45, %v735_v2  ;;  %v793_v4 = vmul.f32 0.0001, %v781_v1  ;;  %vm789_vm10 = vcmp.ge.f32.partialorder %v781_v1, 0.0  ;;  %v3315_v45 = vld [vmem:[#allocation6 + $0x108] sm:$0xff]   ;;  %v3334_v2 = vld [vmem:[#allocation6 + $0xf8] sm:$0xff]  }
 0x228   :  { %v794_v8 = vmul.f32 0.0001, %v784_v3  ;;  %vm790_vm12 = vcmp.ge.f32.partialorder %v784_v3, 0.0  ;;  %v797_v12 = vsel %vm789_vm10, %v781_v1, %v793_v4  ;;  %v3333_v1 = vld [vmem:[#allocation6 + $0x138] sm:$0xff]  }
 0x22a   :  { %v798_v18 = vsel %vm790_vm12, %v784_v3, %v794_v8  ;;  %v2665_v8 = vld [vmem:[%s3781_s2 + $0x1] ss:$0 sm:$0xff] }
 0x236   :  { %v3102_v7 = vpop.f32.mrb[16].mxu0 }
 0x237   :  { %v913_v10 = vadd.f32 %v3102_v7, %v2655_v5  ;;  %v904_v11 = vpop.f32.mrb[17].mxu0 }
 0x238   :  { %v905_v13 = vadd.f32 %v2655_v5, %v904_v11  ;;  %v3103_v44 = vpop.f32.mrb[18].mxu0 }
 0x239   :  { %v921_v14 = vadd.f32 %v913_v10, %v797_v12  ;;  %v916_v16 = vadd.f32 %v3103_v44, %v2655_v5  ;;  %v907_v27 = vpop.f32.mrb[19].mxu0 }
 0x23a   :  { %v919_v17 = vadd.f32 %v905_v13, %v795_v15  ;;  %v908_v19 = vadd.f32 %v2655_v5, %v907_v27 }
 0x23b   :  { %v929_v20 = vmul.f32 0.01, %v921_v14  ;;  %v922_v21 = vadd.f32 %v916_v16, %v798_v18  ;;  %vm925_vm14 = vcmp.ge.f32.partialorder %v921_v14, 0.0 }
 0x23c   :  { %v927_v33 = vmul.f32 0.01, %v919_v17  ;;  %v920_v23 = vadd.f32 %v908_v19, %v796_v22  ;;  %vm923_vm15 = vcmp.ge.f32.partialorder %v919_v17, 0.0 }
 0x23d   :  { %vm926_vm0 = vcmp.ge.f32.partialorder %v922_v21, 0.0  ;;  %v930_v24 = vmul.f32 0.01, %v922_v21  ;;  %v3681_v26 = vsel %vm925_vm14, %v921_v14, %v929_v20 }
 0x23e   :  { %vm924_vm1 = vcmp.ge.f32.partialorder %v920_v23, 0.0  ;;  %v928_v25 = vmul.f32 0.01, %v920_v23  ;;  %v3685_v29 = vsel %vm923_vm15, %v919_v17, %v927_v33 }
 0x23f   :  { %v3683_v28 = vsel %vm926_vm0, %v922_v21, %v930_v24 }
 0x240   :  { %v936_v30 = vpack.c.bf16 %v3683_v28, %v3681_v26  ;;  %v3689_v31 = vsel %vm924_vm1, %v920_v23, %v928_v25 }
 0x241   :  { %v935_v32 = vpack.c.bf16 %v3689_v31, %v3685_v29 }
 0x242   :  { %v993_v34 = vrot.slane %v936_v30, 6  ;;  %v1001_v35 = vrot.slane %v936_v30, 7 }
 0x243   :  { %v992_v36 = vrot.slane %v935_v32, 6  ;;  %v1000_v37 = vrot.slane %v935_v32, 7  ;;  %3120 = vmatprep.mubr.bf16.mxu0 %v935_v32 }
 0x244   :  { %997 = vst [vmem:[#allocation2 + $0x18] sm:$0xfc] %v993_v34  ;;  %1005 = vst [vmem:[#allocation2 + $0x20] sm:$0xfe] %v1001_v35  ;;  %3121 = vmatmul.mubr.bf16.vlgmr.msra.gmra.mrb[20].mxu0 %v936_v30 }
 0x245   :  { %996 = vst [vmem:[#allocation2] sm:$0xfc] %v992_v36  ;;  %1004 = vst [vmem:[#allocation2 + $0x8] sm:$0xfe] %v1000_v37  ;;  %3125 = vmatpush3.bf16.msra.mxu0 %v3317_v43 }
 0x246   :  { %3126 = vmatprep.subr.bf16.mxu0 %v3320_v47 }
 0x249   :  { %3127 = vmatpush3.bf16.msra.mxu0 %v3320_v47 }
 0x24a   :  { %3128 = vmatprep.subr.bf16.mxu0 %v3323_v48 }
 0x24b   :  { %v1012_v38 = vld [vmem:[#allocation2 + $0x20] sm:$0xff]  ;;  %v1011_v39 = vld [vmem:[#allocation2 + $0x18] sm:$0xff] }
 0x24c   :  { %v1009_v41 = vld [vmem:[#allocation2 + $0x8] sm:$0xff]  ;;  %v1008_v42 = vld [vmem:[#allocation2] sm:$0xff]  ;;  %1338 = vst [vmem:[#allocation2 + $0x20] sm:$0x1] %v3502_v0  ;;  %1328 = vst [vmem:[#allocation2 + $0x18] sm:$0x3] %v3502_v0 }
 0x24d   :  { %1196 = vmatprep.mubr.bf16.mxu1 %v1009_v41  ;;  %1337 = vst [vmem:[#allocation2 + $0x8] sm:$0x1] %v3502_v0  ;;  %1327 = vst [vmem:[#allocation2] sm:$0x3] %v3502_v0  ;;  %3129 = vmatpush3.bf16.msra.mxu0 %v3323_v48 }
 0x24e   :  { %1197 = vmatmul.mubr.bf16.vlgmr.msra.gmra.mrb[8].mxu1 %v1008_v42  ;;  %3130 = vmatprep.subr.bf16.mxu0 %v3326_v51 }
 0x24f   :  { %1204 = vmatprep.mubr.bf16.mxu1 %v1012_v38  ;;  %2912 = vmatpush3.bf16.msra.mxu1 %v3314_v40 }
 0x250   :  { %2913 = vmatprep.subr.bf16.mxu1 %v3315_v45 }
 0x251   :  { %3131 = vmatpush3.bf16.msra.mxu0 %v3326_v51  ;;  %v3337_v51 = vld [vmem:[#allocation3 + $0x1c0] sm:$0xff]  }
 0x252   :  { %3132 = vmatprep.subr.bf16.mxu0 %v3329_v54 }
 0x253   :  { %2914 = vmatpush3.bf16.msra.mxu1 %v3316_v46 }
 0x254   :  { %2915 = vmatprep.subr.bf16.mxu1 %v3318_v49 }
 0x255   :  { %3133 = vmatpush3.bf16.msra.mxu0 %v3329_v54  ;;  %v3339_v54 = vld [vmem:[#allocation3 + $0x1c8] sm:$0xff]  }
 0x256   :  { %1205 = vmatmul.mubr.bf16.gmra.mrb[12].mxu1 %v1011_v39  ;;  %3134 = vmatprep.subr.bf16.mxu0 %v3332_v57 }
 0x257   :  { %2916 = vmatpush3.bf16.msra.mxu1 %v3319_v50  ;;  %v3340_v50 = vld [vmem:[#allocation3 + $0x200] sm:$0xff]  }
 0x258   :  { %2917 = vmatprep.subr.bf16.mxu1 %v3321_v52  ;;  %v3338_v52 = vld [vmem:[#allocation3 + $0x180] sm:$0xff]  }
 0x259   :  { %3135 = vmatpush3.bf16.msra.mxu0 %v3332_v57  ;;  %v3342_v57 = vld [vmem:[#allocation3 + $0x1d0] sm:$0xff]  }
 0x25a   :  { %3136 = vmatprep.subr.bf16.mxu0 %v3335_v60 }
 0x25b   :  { %2918 = vmatpush3.bf16.msra.mxu1 %v3322_v53  ;;  %v3343_v53 = vld [vmem:[#allocation3 + $0x208] sm:$0xff]  }
 0x25c   :  { %2919 = vmatprep.subr.bf16.mxu1 %v3324_v55  ;;  %v3341_v55 = vld [vmem:[#allocation3 + $0x188] sm:$0xff]  }
 0x25d   :  { %3137 = vmatpush3.bf16.msra.mxu0 %v3335_v60  ;;  %v3345_v60 = vld [vmem:[#allocation3 + $0x1d8] sm:$0xff]  }
 0x25e   :  { %3138 = vmatprep.subr.bf16.mxu0 %v3336_v63 }
 0x25f   :  { %2920 = vmatpush3.bf16.msra.mxu1 %v3325_v56  ;;  %v3346_v56 = vld [vmem:[#allocation3 + $0x210] sm:$0xff]  }
 0x260   :  { %2921 = vmatprep.subr.bf16.mxu1 %v3327_v58  ;;  %v3344_v58 = vld [vmem:[#allocation3 + $0x190] sm:$0xff]  }
 0x261   :  { %3139 = vmatpush3.bf16.msra.mxu0 %v3336_v63  ;;  %v3348_v63 = vld [vmem:[#allocation3 + $0x1e0] sm:$0xff]  }
 0x262   :  { %3144 = vmatprep.subr.bf16.mxu0 %v3340_v50 }
 0x263   :  { %2922 = vmatpush3.bf16.msra.mxu1 %v3328_v59  ;;  %v3349_v59 = vld [vmem:[#allocation3 + $0x218] sm:$0xff]  }
 0x264   :  { %2923 = vmatprep.subr.bf16.mxu1 %v3330_v61  ;;  %v3347_v61 = vld [vmem:[#allocation3 + $0x198] sm:$0xff]  }
 0x267   :  { %2924 = vmatpush3.bf16.msra.mxu1 %v3331_v62  ;;  %v3352_v62 = vld [vmem:[#allocation3 + $0x220] sm:$0xff]  }
 0x268   :  { %2925 = vmatprep.subr.bf16.mxu1 %v3333_v1  ;;  %v3350_v1 = vld [vmem:[#allocation3 + $0x1a0] sm:$0xff]  }
 0x26b   :  { %2926 = vmatpush3.bf16.msra.mxu1 %v3334_v2  ;;  %v3355_v2 = vld [vmem:[#allocation3 + $0x228] sm:$0xff]  }
 0x26c   :  { %2949 = vmatprep.subr.bf16.mxu1 %v3337_v51 }
 0x317   :  { %v3122_v3 = vpop.f32.mrb[20].mxu0 }
 0x318   :  { %v1247_v4 = vpop.f32.mrb[21].mxu0 }
 0x319   :  { %v3123_v5 = vpop.f32.mrb[22].mxu0 }
 0x31a   :  { %v1250_v6 = vpop.f32.mrb[23].mxu0 }
 0x321   :  { %v2889_v7 = vpop.f32.mrb[8].mxu1 }
 0x322   :  { %v2890_v9 = vpop.f32.mrb[9].mxu1 }
 0x323   :  { %v2891_v10 = vadd.f32 %v2890_v9, %v2889_v7  ;;  %v2892_v11 = vpop.f32.mrb[10].mxu1  ;;  %v3356_v7 = vld [vmem:[#allocation3 + $0x1b0] sm:$0xff]   ;;  %v3357_v9 = vld [vmem:[#allocation3 + $0x1f8] sm:$0xff]  }
 0x324   :  { %v2893_v12 = vpop.f32.mrb[11].mxu1 }
 0x325   :  { %v1199_v13 = vadd.f32 %v2891_v10, %v2665_v8  ;;  %v2894_v44 = vadd.f32 %v2893_v12, %v2892_v11  ;;  %v3359_v10 = vld [vmem:[#allocation3 + $0x1b8] sm:$0xff]   ;;  %v3361_v11 = vld [vmem:[#allocation6 + $0x1c0] sm:$0xff]  }
 0x326   :  { %v3704_v12 = vld [vmem:[#allocation6 + $0x200] sm:$0xff]  }
 0x327   :  { %v1248_v14 = vadd.f32 %v1247_v4, %v1199_v13  ;;  %v1202_v15 = vadd.f32 %v2894_v44, %v2665_v8  ;;  %v3353_v4 = vld [vmem:[#allocation3 + $0x1a8] sm:$0xff]  }
 0x329   :  { %v1266_v16 = vmul.f32 0.01, %v1248_v14  ;;  %v1251_v27 = vadd.f32 %v1250_v6, %v1202_v15  ;;  %v2895_v17 = vpop.f32.mrb[12].mxu1  ;;  %vm1262_vm2 = vcmp.ge.f32.partialorder %v1248_v14, 0.0  ;;  %v3354_v6 = vld [vmem:[#allocation3 + $0x1f0] sm:$0xff]  }
 0x32a   :  { %v2896_v18 = vpop.f32.mrb[13].mxu1 }
 0x32b   :  { %vm1263_vm3 = vcmp.ge.f32.partialorder %v1251_v27, 0.0  ;;  %v1267_v19 = vmul.f32 0.01, %v1251_v27  ;;  %v2897_v20 = vadd.f32 %v2896_v18, %v2895_v17  ;;  %v2898_v21 = vpop.f32.mrb[14].mxu1  ;;  %v1270_v33 = vsel %vm1262_vm2, %v1248_v14, %v1266_v16  ;;  %v2691_v17 = vld [vmem:[%s3783_s4 + $0x1] ss:$0 sm:$0xff] }
 0x32c   :  { %v2899_v22 = vpop.f32.mrb[15].mxu1  ;;  %vm3504_vm2 = vmmov 0  }
 0x32d   :  { %v1271_v23 = vsel %vm1263_vm3, %v1251_v27, %v1267_v19  ;;  %v1207_v24 = vadd.f32 %v2897_v20, %v2665_v8  ;;  %v2900_v25 = vadd.f32 %v2899_v22, %v2898_v21 }
 0x32e   :  { %v1274_v30 = vpack.c.bf16 %v1271_v23, %v1270_v33 }
 0x32f   :  { %v1256_v32 = vadd.f32 %v3122_v3, %v1207_v24  ;;  %v1210_v34 = vadd.f32 %v2900_v25, %v2665_v8  ;;  %v3351_v3 = vld [vmem:[#allocation3 + $0x1e8] sm:$0xff]   ;;  %v3360_v8 = vld [vmem:[#allocation3 + $0x238] sm:$0xff]  }
 0x330   :  { %v1331_v35 = vrot.slane %v1274_v30, 6  ;;  %v1339_v36 = vrot.slane %v1274_v30, 7  ;;  %3140 = vmatprep.mubr.bf16.mxu0 %v1274_v30 }
 0x331   :  { %v1268_v37 = vmul.f32 0.01, %v1256_v32  ;;  %v1259_v38 = vadd.f32 %v3123_v5, %v1210_v34  ;;  %vm1264_vm4 = vcmp.ge.f32.partialorder %v1256_v32, 0.0  ;;  %v3358_v5 = vld [vmem:[#allocation3 + $0x230] sm:$0xff]  }
 0x332   :  { %1335 = vst [vmem:[#allocation2] sm:$0xfc] %v1331_v35  ;;  %1343 = vst [vmem:[#allocation2 + $0x8] sm:$0xfe] %v1339_v36 }
 0x333   :  { %vm1265_vm5 = vcmp.ge.f32.partialorder %v1259_v38, 0.0  ;;  %v1269_v39 = vmul.f32 0.01, %v1259_v38  ;;  %v1272_v40 = vsel %vm1264_vm4, %v1256_v32, %v1268_v37 }
 0x335   :  { %v1273_v41 = vsel %vm1265_vm5, %v1259_v38, %v1269_v39 }
 0x336   :  { %v1275_v42 = vpack.c.bf16 %v1273_v41, %v1272_v40 }
 0x338   :  { %v1332_v43 = vrot.slane %v1275_v42, 6  ;;  %v1340_v45 = vrot.slane %v1275_v42, 7  ;;  %3141 = vmatmul.mubr.bf16.vlgmr.msra.gmra.mrb[24].mxu0 %v1275_v42 }
 0x339   :  { %v1348_v46 = vld [vmem:[#allocation2 + $0x8] sm:$0xff]  ;;  %v1347_v47 = vld [vmem:[#allocation2] sm:$0xff]  ;;  %3145 = vmatpush3.bf16.msra.mxu0 %v3340_v50 }
 0x33a   :  { %1336 = vst [vmem:[#allocation2 + $0x18] sm:$0xfc] %v1332_v43  ;;  %1344 = vst [vmem:[#allocation2 + $0x20] sm:$0xfe] %v1340_v45  ;;  %1535 = vmatprep.mubr.bf16.mxu1 %v1348_v46  ;;  %3146 = vmatprep.subr.bf16.mxu0 %v3343_v53 }
 0x33b   :  { %1692 = vst [vmem:[#allocation2 + $0x8] sm:$0x3] %v3502_v0  ;;  %1682 = vst [vmem:[#allocation2] sm:$0xf] %v3502_v0  ;;  %1536 = vmatmul.mubr.bf16.vlgmr.msra.gmra.mrb[16].mxu1 %v1347_v47 }
 0x33c   :  { %2950 = vmatpush3.bf16.msra.mxu1 %v3338_v52 }
 0x33d   :  { %3147 = vmatpush3.bf16.msra.mxu0 %v3343_v53  ;;  %2951 = vmatprep.subr.bf16.mxu1 %v3339_v54 }
 0x33e   :  { %3148 = vmatprep.subr.bf16.mxu0 %v3346_v56 }
 0x340   :  { %2952 = vmatpush3.bf16.msra.mxu1 %v3341_v55 }
 0x341   :  { %v1351_v48 = vld [vmem:[#allocation2 + $0x20] sm:$0xff]  ;;  %v1350_v49 = vld [vmem:[#allocation2 + $0x18] sm:$0xff]  ;;  %3149 = vmatpush3.bf16.msra.mxu0 %v3346_v56  ;;  %2953 = vmatprep.subr.bf16.mxu1 %v3342_v57 }
 0x342   :  { %1543 = vmatprep.mubr.bf16.mxu1 %v1351_v48  ;;  %1693 = vst [vmem:[#allocation2 + $0x20] sm:$0x3] %v3502_v0  ;;  %1683 = vst [vmem:[#allocation2 + $0x18] sm:$0xf] %v3502_v0  ;;  %3150 = vmatprep.subr.bf16.mxu0 %v3349_v59 }
 0x343   :  { %1544 = vmatmul.mubr.bf16.gmra.mrb[20].mxu1 %v1350_v49 }
 0x344   :  { %2954 = vmatpush3.bf16.msra.mxu1 %v3344_v58 }
 0x345   :  { %3151 = vmatpush3.bf16.msra.mxu0 %v3349_v59  ;;  %2955 = vmatprep.subr.bf16.mxu1 %v3345_v60 }
 0x346   :  { %3152 = vmatprep.subr.bf16.mxu0 %v3352_v62 }
 0x348   :  { %2956 = vmatpush3.bf16.msra.mxu1 %v3347_v61 }
 0x349   :  { %3153 = vmatpush3.bf16.msra.mxu0 %v3352_v62  ;;  %2957 = vmatprep.subr.bf16.mxu1 %v3348_v63 }
 0x34a   :  { %3154 = vmatprep.subr.bf16.mxu0 %v3355_v2 }
 0x34c   :  { %2958 = vmatpush3.bf16.msra.mxu1 %v3350_v1 }
 0x34d   :  { %3155 = vmatpush3.bf16.msra.mxu0 %v3355_v2  ;;  %2959 = vmatprep.subr.bf16.mxu1 %v3351_v3  ;;  %v3362_v2 = vld [vmem:[#allocation6 + $0x180] sm:$0xff]  }
 0x34e   :  { %3156 = vmatprep.subr.bf16.mxu0 %v3358_v5 }
 0x350   :  { %2960 = vmatpush3.bf16.msra.mxu1 %v3353_v4 }
 0x351   :  { %3157 = vmatpush3.bf16.msra.mxu0 %v3358_v5  ;;  %2961 = vmatprep.subr.bf16.mxu1 %v3354_v6  ;;  %v3363_v5 = vld [vmem:[#allocation6 + $0x1c8] sm:$0xff]  }
 0x352   :  { %3158 = vmatprep.subr.bf16.mxu0 %v3360_v8 }
 0x354   :  { %2962 = vmatpush3.bf16.msra.mxu1 %v3356_v7 }
 0x355   :  { %3159 = vmatpush3.bf16.msra.mxu0 %v3360_v8  ;;  %2963 = vmatprep.subr.bf16.mxu1 %v3357_v9  ;;  %v3368_v8 = vld [vmem:[#allocation6 + $0x208] sm:$0xff]   ;;  %v3371_v9 = vld [vmem:[#allocation6 + $0x210] sm:$0xff]  }
 0x356   :  { %3164 = vmatprep.subr.bf16.mxu0 %v3704_v12 }
 0x358   :  { %2964 = vmatpush3.bf16.msra.mxu1 %v3359_v10  ;;  %v3366_v10 = vld [vmem:[#allocation6 + $0x1d0] sm:$0xff]  }
 0x359   :  { %2987 = vmatprep.subr.bf16.mxu1 %v3361_v11  ;;  %v3367_v11 = vld [vmem:[#allocation6 + $0x190] sm:$0xff]  }
 0x40b   :  { %v3142_v13 = vpop.f32.mrb[24].mxu0 }
 0x40c   :  { %v1586_v44 = vpop.f32.mrb[25].mxu0 }
 0x40d   :  { %v3143_v14 = vpop.f32.mrb[26].mxu0 }
 0x40e   :  { %v2927_v15 = vpop.f32.mrb[16].mxu1  ;;  %v1589_v16 = vpop.f32.mrb[27].mxu0 }
 0x40f   :  { %v2928_v27 = vpop.f32.mrb[17].mxu1 }
 0x410   :  { %v2929_v18 = vadd.f32 %v2928_v27, %v2927_v15  ;;  %v2930_v19 = vpop.f32.mrb[18].mxu1  ;;  %v3373_v15 = vld [vmem:[#allocation6 + $0x1a0] sm:$0xff]   ;;  %v3375_v27 = vld [vmem:[#allocation6 + $0x1e8] sm:$0xff]  }
 0x411   :  { %v2931_v20 = vpop.f32.mrb[19].mxu1 }
 0x412   :  { %v2932_v21 = vadd.f32 %v2931_v20, %v2930_v19  ;;  %v1538_v22 = vadd.f32 %v2929_v18, %v2691_v17  ;;  %v3383_v18 = vld [vmem:[#allocation6 + $0x230] sm:$0xff]  }
 0x413   :  { %v3378_v19 = vld [vmem:[#allocation6 + $0x1f0] sm:$0xff]  }
 0x414   :  { %v1587_v33 = vadd.f32 %v1586_v44, %v1538_v22  ;;  %v1541_v23 = vadd.f32 %v2932_v21, %v2691_v17  ;;  %v3370_v44 = vld [vmem:[#allocation6 + $0x198] sm:$0xff]   ;;  %v3379_v20 = vld [vmem:[#allocation6 + $0x1b0] sm:$0xff]  }
 0x415   :  { %v3385_v21 = vld [vmem:[#allocation6 + $0x238] sm:$0xff]  }
 0x416   :  { %vm1601_vm6 = vcmp.ge.f32.partialorder %v1587_v33, 0.0  ;;  %v1605_v24 = vmul.f32 0.0001, %v1587_v33  ;;  %v2933_v25 = vpop.f32.mrb[20].mxu1  ;;  %v1590_v30 = vadd.f32 %v1589_v16, %v1541_v23  ;;  %v3380_v16 = vld [vmem:[#allocation6 + $0x228] sm:$0xff]   ;;  %v3381_v22 = vld [vmem:[#allocation6 + $0x1f8] sm:$0xff]  }
 0x417   :  { %v2934_v32 = vpop.f32.mrb[21].mxu1  ;;  %v3384_v23 = vld [vmem:[#allocation8 + $0x80] sm:$0xff]  }
 0x418   :  { %v1609_v34 = vsel %vm1601_vm6, %v1587_v33, %v1605_v24  ;;  %vm1602_vm7 = vcmp.ge.f32.partialorder %v1590_v30, 0.0  ;;  %v1606_v35 = vmul.f32 0.0001, %v1590_v30  ;;  %v2935_v36 = vadd.f32 %v2934_v32, %v2933_v25  ;;  %v2936_v37 = vpop.f32.mrb[22].mxu1  ;;  %v3382_v33 = vld [vmem:[#allocation6 + $0x1b8] sm:$0xff]  }
 0x419   :  { %v1613_v38 = vadd.f32 %v1609_v34, %v3685_v29  ;;  %v2937_v39 = vpop.f32.mrb[23].mxu1 }
 0x41a   :  { %v1610_v40 = vsel %vm1602_vm7, %v1590_v30, %v1606_v35  ;;  %v1546_v41 = vadd.f32 %v2935_v36, %v2691_v17  ;;  %v2938_v42 = vadd.f32 %v2937_v39, %v2936_v37  ;;  %v2717_v36 = vld [vmem:[%s3781_s2 + $0x2] ss:$0 sm:$0xff] }
 0x41b   :  { %v1621_v43 = vmul.f32 0.01, %v1613_v38  ;;  %v1614_v45 = vadd.f32 %v1610_v40, %v3689_v31  ;;  %vm1617_vm8 = vcmp.ge.f32.partialorder %v1613_v38, 0.0 }
 0x41c   :  { %v1595_v46 = vadd.f32 %v3142_v13, %v1546_v41  ;;  %v1549_v47 = vadd.f32 %v2938_v42, %v2691_v17  ;;  %v3369_v13 = vld [vmem:[#allocation6 + $0x1d8] sm:$0xff]   ;;  %v3376_v17 = vld [vmem:[#allocation6 + $0x1a8] sm:$0xff]  }
 0x41d   :  { %vm1618_vm9 = vcmp.ge.f32.partialorder %v1614_v45, 0.0  ;;  %v1622_v48 = vmul.f32 0.01, %v1614_v45  ;;  %v1625_v51 = vsel %vm1617_vm8, %v1613_v38, %v1621_v43 }
 0x41e   :  { %vm1603_vm10 = vcmp.ge.f32.partialorder %v1595_v46, 0.0  ;;  %v1607_v49 = vmul.f32 0.0001, %v1595_v46  ;;  %v1598_v50 = vadd.f32 %v3143_v14, %v1549_v47  ;;  %v3377_v14 = vld [vmem:[#allocation6 + $0x220] sm:$0xff]  }
 0x41f   :  { %v1626_v52 = vsel %vm1618_vm9, %v1614_v45, %v1622_v48 }
 0x420   :  { %v3712_v53 = vpack.c.bf16 %v1626_v52, %v1625_v51  ;;  %v1611_v29 = vsel %vm1603_vm10, %v1595_v46, %v1607_v49  ;;  %vm1604_vm11 = vcmp.ge.f32.partialorder %v1598_v50, 0.0  ;;  %v1608_v54 = vmul.f32 0.0001, %v1598_v50 }
 0x421   :  { %v1615_v55 = vadd.f32 %v1611_v29, %v3681_v26 }
 0x422   :  { %v1686_v56 = vrot.slane %v3712_v53, 4  ;;  %v1694_v31 = vrot.slane %v3712_v53, 6  ;;  %v1612_v57 = vsel %vm1604_vm11, %v1598_v50, %v1608_v54  ;;  %3160 = vmatprep.mubr.bf16.mxu0 %v3712_v53  ;;  %vm2488_vm11 = vcmask 1041409  }
 0x423   :  { %v1623_v58 = vmul.f32 0.01, %v1615_v55  ;;  %v1616_v59 = vadd.f32 %v1612_v57, %v3683_v28  ;;  %vm1619_vm12 = vcmp.ge.f32.partialorder %v1615_v55, 0.0  ;;  %v3364_v28 = vld [vmem:[#allocation6 + $0x188] sm:$0xff]  }
 0x424   :  { %1690 = vst [vmem:[#allocation2] sm:$0xf0] %v1686_v56  ;;  %1698 = vst [vmem:[#allocation2 + $0x8] sm:$0xfc] %v1694_v31 }
 0x425   :  { %vm1620_vm13 = vcmp.ge.f32.partialorder %v1616_v59, 0.0  ;;  %v1624_v60 = vmul.f32 0.01, %v1616_v59  ;;  %v1627_v61 = vsel %vm1619_vm12, %v1615_v55, %v1623_v58  ;;  %vm2581_vm12 = vcmask 1041408  }
 0x427   :  { %v1628_v62 = vsel %vm1620_vm13, %v1616_v59, %v1624_v60 }
 0x428   :  { %v3719_v63 = vpack.c.bf16 %v1628_v62, %v1627_v61 }
 0x42a   :  { %v1687_v26 = vrot.slane %v3719_v63, 4  ;;  %v1695_v1 = vrot.slane %v3719_v63, 6  ;;  %3161 = vmatmul.mubr.bf16.vlgmr.msra.gmra.mrb[28].mxu0 %v3719_v63 }
 0x42b   :  { %v1703_v3 = vld [vmem:[#allocation2 + $0x8] sm:$0xff]  ;;  %v1702_v4 = vld [vmem:[#allocation2] sm:$0xff]  ;;  %3165 = vmatpush3.bf16.msra.mxu0 %v3704_v12 }
 0x42c   :  { %1691 = vst [vmem:[#allocation2 + $0x18] sm:$0xf0] %v1687_v26  ;;  %1699 = vst [vmem:[#allocation2 + $0x20] sm:$0xfc] %v1695_v1  ;;  %1890 = vmatprep.mubr.bf16.mxu1 %v1703_v3  ;;  %3166 = vmatprep.subr.bf16.mxu0 %v3368_v8  ;;  %v3374_v12 = vld [vmem:[#allocation6 + $0x218] sm:$0xff]  }
 0x42d   :  { %2031 = vst [vmem:[#allocation2 + $0x8] sm:$0x3] %v3502_v0  ;;  %2021 = vst [vmem:[#allocation2] sm:$0xf] %v3502_v0  ;;  %1891 = vmatmul.mubr.bf16.vlgmr.msra.gmra.mrb[24].mxu1 %v1702_v4 }
 0x42e   :  { %2988 = vmatpush3.bf16.msra.mxu1 %v3362_v2 }
 0x42f   :  { %2989 = vmatprep.subr.bf16.mxu1 %v3363_v5  ;;  %3167 = vmatpush3.bf16.msra.mxu0 %v3368_v8  ;;  %v3387_v8 = vld [vmem:[#allocation8 + $0x90] sm:$0xff]  }
 0x430   :  { %3168 = vmatprep.subr.bf16.mxu0 %v3371_v9 }
 0x432   :  { %2990 = vmatpush3.bf16.msra.mxu1 %v3364_v28 }
 0x433   :  { %v1706_v6 = vld [vmem:[#allocation2 + $0x20] sm:$0xff]  ;;  %v1705_v7 = vld [vmem:[#allocation2 + $0x18] sm:$0xff]  ;;  %3169 = vmatpush3.bf16.msra.mxu0 %v3371_v9  ;;  %2991 = vmatprep.subr.bf16.mxu1 %v3366_v10 }
 0x434   :  { %1898 = vmatprep.mubr.bf16.mxu1 %v1706_v6  ;;  %2032 = vst [vmem:[#allocation2 + $0x20] sm:$0x3] %v3502_v0  ;;  %2022 = vst [vmem:[#allocation2 + $0x18] sm:$0xf] %v3502_v0  ;;  %3170 = vmatprep.subr.bf16.mxu0 %v3374_v12  ;;  %v3372_v0 = vld [vmem:[#allocation6 + $0x1e0] sm:$0xff]  }
 0x435   :  { %1899 = vmatmul.mubr.bf16.gmra.mrb[28].mxu1 %v1705_v7  ;;  %v3386_v7 = vld [vmem:[#allocation8 + $0x88] sm:$0xff]  }
 0x436   :  { %2992 = vmatpush3.bf16.msra.mxu1 %v3367_v11  ;;  %v3388_v11 = vld [vmem:[#allocation8 + $0x98] sm:$0xff]  }
 0x437   :  { %3171 = vmatpush3.bf16.msra.mxu0 %v3374_v12  ;;  %2993 = vmatprep.subr.bf16.mxu1 %v3369_v13  ;;  %v3389_v12 = vld [vmem:[#allocation8 + $0xa0] sm:$0xff]   ;;  %v3390_v13 = vld [vmem:[#allocation8 + $0xa8] sm:$0xff]  }
 0x438   :  { %3172 = vmatprep.subr.bf16.mxu0 %v3377_v14 }
 0x43a   :  { %2994 = vmatpush3.bf16.msra.mxu1 %v3370_v44  ;;  %v3391_v44 = vld [vmem:[#allocation8 + $0xb0] sm:$0xff]  }
 0x43b   :  { %3173 = vmatpush3.bf16.msra.mxu0 %v3377_v14  ;;  %2995 = vmatprep.subr.bf16.mxu1 %v3372_v0  ;;  %v3392_v14 = vld [vmem:[#allocation8 + $0xb8] sm:$0xff]   ;;  %v3503_v0 = vmov 0.0  }
 0x43c   :  { %3174 = vmatprep.subr.bf16.mxu0 %v3380_v16 }
 0x43e   :  { %2996 = vmatpush3.bf16.msra.mxu1 %v3373_v15  ;;  %v3394_v15 = vld [vmem:[%s3786_s7 + $0x8] sm:$0xff]  }
 0x43f   :  { %3175 = vmatpush3.bf16.msra.mxu0 %v3380_v16  ;;  %2997 = vmatprep.subr.bf16.mxu1 %v3375_v27  ;;  %v3395_v16 = vld [vmem:[%s3786_s7 + $0x10] sm:$0xff]   ;;  %v3397_v27 = vld [vmem:[%s3786_s7 + $0x20] sm:$0xff]  }
 0x440   :  { %3176 = vmatprep.subr.bf16.mxu0 %v3383_v18 }
 0x442   :  { %2998 = vmatpush3.bf16.msra.mxu1 %v3376_v17  ;;  %v3398_v17 = vld [vmem:[%s3786_s7 + $0x28] sm:$0xff]  }
 0x443   :  { %3177 = vmatpush3.bf16.msra.mxu0 %v3383_v18  ;;  %2999 = vmatprep.subr.bf16.mxu1 %v3378_v19  ;;  %v3399_v18 = vld [vmem:[%s3786_s7 + $0x30] sm:$0xff]   ;;  %v3400_v19 = vld [vmem:[%s3786_s7 + $0x38] sm:$0xff]  }
 0x444   :  { %3178 = vmatprep.subr.bf16.mxu0 %v3385_v21 }
 0x446   :  { %3000 = vmatpush3.bf16.msra.mxu1 %v3379_v20 }
 0x447   :  { %3001 = vmatprep.subr.bf16.mxu1 %v3381_v22  ;;  %3179 = vmatpush3.bf16.msra.mxu0 %v3385_v21 }
 0x448   :  { %3204 = vmatprep.subr.bf16.mxu0 %v3503_v0 }
 0x44a   :  { %3002 = vmatpush3.bf16.msra.mxu1 %v3382_v33 }
 0x44b   :  { %3184 = vmatprep.subr.bf16.mxu1 %v3384_v23 }
 0x4fd   :  { %v3162_v24 = vpop.f32.mrb[28].mxu0 }
 0x4fe   :  { %v1941_v25 = vpop.f32.mrb[29].mxu0 }
 0x4ff   :  { %v3163_v30 = vpop.f32.mrb[30].mxu0 }
 0x500   :  { %v2965_v32 = vpop.f32.mrb[24].mxu1  ;;  %v1944_v34 = vpop.f32.mrb[31].mxu0 }
 0x501   :  { %v2966_v35 = vpop.f32.mrb[25].mxu1 }
 0x502   :  { %v2967_v37 = vadd.f32 %v2966_v35, %v2965_v32  ;;  %v2968_v38 = vpop.f32.mrb[26].mxu1 }
 0x503   :  { %v2969_v39 = vpop.f32.mrb[27].mxu1 }
 0x504   :  { %v2970_v40 = vadd.f32 %v2969_v39, %v2968_v38  ;;  %v1893_v41 = vadd.f32 %v2967_v37, %v2717_v36 }
 0x506   :  { %v1942_v42 = vadd.f32 %v1941_v25, %v1893_v41  ;;  %v1896_v43 = vadd.f32 %v2970_v40, %v2717_v36  ;;  %v2743_v25 = vld [vmem:[%s3783_s4 + $0x2] ss:$0 sm:$0xff] }
 0x508   :  { %v1960_v45 = vmul.f32 0.01, %v1942_v42  ;;  %v1945_v46 = vadd.f32 %v1944_v34, %v1896_v43  ;;  %v2971_v47 = vpop.f32.mrb[28].mxu1  ;;  %vm1956_vm14 = vcmp.ge.f32.partialorder %v1942_v42, 0.0 }
 0x509   :  { %v2972_v48 = vpop.f32.mrb[29].mxu1 }
 0x50a   :  { %vm1957_vm15 = vcmp.ge.f32.partialorder %v1945_v46, 0.0  ;;  %v1961_v49 = vmul.f32 0.01, %v1945_v46  ;;  %v2973_v50 = vadd.f32 %v2972_v48, %v2971_v47  ;;  %v2974_v51 = vpop.f32.mrb[30].mxu1  ;;  %v1964_v29 = vsel %vm1956_vm14, %v1942_v42, %v1960_v45 }
 0x50b   :  { %v2975_v52 = vpop.f32.mrb[31].mxu1 }
 0x50c   :  { %v1965_v54 = vsel %vm1957_vm15, %v1945_v46, %v1961_v49  ;;  %v1901_v55 = vadd.f32 %v2973_v50, %v2717_v36  ;;  %v2976_v56 = vadd.f32 %v2975_v52, %v2974_v51  ;;  %v2769_v52 = vld [vmem:[%s3785_s6 + $0x2] ss:$0 sm:$0xff] }
 0x50d   :  { %v1968_v31 = vpack.c.bf16 %v1965_v54, %v1964_v29 }
 0x50e   :  { %v1950_v57 = vadd.f32 %v3162_v24, %v1901_v55  ;;  %v1904_v58 = vadd.f32 %v2976_v56, %v2717_v36 }
 0x50f   :  { %v2025_v59 = vrot.slane %v1968_v31, 4  ;;  %v2033_v60 = vrot.slane %v1968_v31, 6  ;;  %3180 = vmatprep.mubr.bf16.mxu0 %v1968_v31 }
 0x510   :  { %v1962_v61 = vmul.f32 0.01, %v1950_v57  ;;  %v1953_v62 = vadd.f32 %v3163_v30, %v1904_v58  ;;  %vm1958_vm0 = vcmp.ge.f32.partialorder %v1950_v57, 0.0 }
 0x511   :  { %2029 = vst [vmem:[#allocation2] sm:$0xf0] %v2025_v59  ;;  %2037 = vst [vmem:[#allocation2 + $0x8] sm:$0xfc] %v2033_v60 }
 0x512   :  { %vm1959_vm1 = vcmp.ge.f32.partialorder %v1953_v62, 0.0  ;;  %v1963_v26 = vmul.f32 0.01, %v1953_v62  ;;  %v1966_v1 = vsel %vm1958_vm0, %v1950_v57, %v1962_v61 }
 0x514   :  { %v1967_v2 = vsel %vm1959_vm1, %v1953_v62, %v1963_v26 }
 0x515   :  { %v1969_v3 = vpack.c.bf16 %v1967_v2, %v1966_v1 }
 0x517   :  { %v2026_v4 = vrot.slane %v1969_v3, 4  ;;  %v2034_v5 = vrot.slane %v1969_v3, 6  ;;  %3181 = vmatmul.mubr.bf16.vlgmr.msra.gmra.mrb[32].mxu0 %v1969_v3 }
 0x518   :  { %v2042_v28 = vld [vmem:[#allocation2 + $0x8] sm:$0xff]  ;;  %v2041_v6 = vld [vmem:[#allocation2] sm:$0xff]  ;;  %3220 = vmatprep.mubr.msk.bf16.mxu0 %vm3504_vm2, %v3503_v0 }
 0x519   :  { %2030 = vst [vmem:[#allocation2 + $0x18] sm:$0xf0] %v2026_v4  ;;  %2038 = vst [vmem:[#allocation2 + $0x20] sm:$0xfc] %v2034_v5  ;;  %2229 = vmatprep.mubr.bf16.mxu1 %v2042_v28 }
 0x51a   :  { %2230 = vmatmul.mubr.bf16.vlgmr.msra.gmra.mrb[32].mxu1 %v2041_v6 }
 0x51b   :  { %3185 = vmatpush3.bf16.msra.mxu1 %v3384_v23 }
 0x51c   :  { %3186 = vmatprep.subr.bf16.mxu1 %v3386_v7 }
 0x51f   :  { %3187 = vmatpush3.bf16.msra.mxu1 %v3386_v7 }
 0x520   :  { %v2045_v9 = vld [vmem:[#allocation2 + $0x20] sm:$0xff]  ;;  %3188 = vmatprep.subr.bf16.mxu1 %v3387_v8  ;;  %v2044_v10 = vld [vmem:[#allocation2 + $0x18] sm:$0xff] }
 0x521   :  { %2237 = vmatprep.mubr.bf16.mxu1 %v2045_v9 }
 0x522   :  { %2238 = vmatmul.mubr.bf16.gmra.mrb[36].mxu1 %v2044_v10 }
 0x523   :  { %3189 = vmatpush3.bf16.msra.mxu1 %v3387_v8  ;;  %3200 = vmatprep.mubr.bf16.mxu1 %v3712_v53  ;;  %v3393_v53 = vld [vmem:[%s3786_s7] sm:$0xff]  }
 0x524   :  { %3190 = vmatprep.subr.bf16.mxu1 %v3388_v11  ;;  %3205 = vmatpush3.bf16.msra.mxu0 %v3393_v53 }
 0x525   :  { %3206 = vmatprep.subr.bf16.mxu0 %v3503_v0 }
 0x527   :  { %3191 = vmatpush3.bf16.msra.mxu1 %v3388_v11 }
 0x528   :  { %3192 = vmatprep.subr.bf16.mxu1 %v3389_v12  ;;  %3207 = vmatpush3.bf16.msra.mxu0 %v3394_v15 }
 0x529   :  { %3208 = vmatprep.subr.bf16.mxu0 %v3503_v0 }
 0x52b   :  { %3193 = vmatpush3.bf16.msra.mxu1 %v3389_v12 }
 0x52c   :  { %3194 = vmatprep.subr.bf16.mxu1 %v3390_v13  ;;  %3209 = vmatpush3.bf16.msra.mxu0 %v3395_v16 }
 0x52d   :  { %3210 = vmatprep.subr.bf16.mxu0 %v3503_v0 }
 0x52f   :  { %3195 = vmatpush3.bf16.msra.mxu1 %v3390_v13 }
 0x530   :  { %3196 = vmatprep.subr.bf16.mxu1 %v3391_v44 }
 0x533   :  { %3197 = vmatpush3.bf16.msra.mxu1 %v3391_v44 }
 0x534   :  { %3198 = vmatprep.subr.bf16.mxu1 %v3392_v14 }
 0x537   :  { %3199 = vmatpush3.bf16.msra.mxu1 %v3392_v14 }
 0x53a   :  { %3201 = vmatmul.mubr.bf16.vlgmr.msra.gmra.mrb[40].mxu1 %v3719_v63  ;;  %v3396_v63 = vld [vmem:[%s3786_s7 + $0x18] sm:$0xff]  }
 0x53b   :  { %3211 = vmatpush3.bf16.msra.mxu0 %v3396_v63 }
 0x53c   :  { %3212 = vmatprep.subr.bf16.mxu0 %v3503_v0 }
 0x53f   :  { %3213 = vmatpush3.bf16.msra.mxu0 %v3397_v27 }
 0x540   :  { %3214 = vmatprep.subr.bf16.mxu0 %v3503_v0 }
 0x543   :  { %3215 = vmatpush3.bf16.msra.mxu0 %v3398_v17 }
 0x544   :  { %3216 = vmatprep.subr.bf16.mxu0 %v3503_v0 }
 0x547   :  { %3217 = vmatpush3.bf16.msra.mxu0 %v3399_v18 }
 0x548   :  { %3218 = vmatprep.subr.bf16.mxu0 %v3503_v0 }
 0x54b   :  { %3219 = vmatpush3.bf16.msra.mxu0 %v3400_v19 }
 0x5ea   :  { %v3182_v20 = vpop.f32.mrb[32].mxu0 }
 0x5eb   :  { %v2280_v21 = vpop.f32.mrb[33].mxu0 }
 0x5ec   :  { %v3183_v22 = vpop.f32.mrb[34].mxu0 }
 0x5ed   :  { %v3003_v33 = vpop.f32.mrb[32].mxu1  ;;  %v2283_v23 = vpop.f32.mrb[35].mxu0 }
 0x5ee   :  { %v3004_v24 = vpop.f32.mrb[33].mxu1 }
 0x5ef   :  { %v3005_v30 = vadd.f32 %v3004_v24, %v3003_v33  ;;  %v3006_v32 = vpop.f32.mrb[34].mxu1 }
 0x5f0   :  { %v3007_v34 = vpop.f32.mrb[35].mxu1 }
 0x5f1   :  { %v3008_v35 = vadd.f32 %v3007_v34, %v3006_v32  ;;  %v2232_v36 = vadd.f32 %v3005_v30, %v2743_v25 }
 0x5f3   :  { %v2281_v37 = vadd.f32 %v2280_v21, %v2232_v36  ;;  %v2235_v38 = vadd.f32 %v3008_v35, %v2743_v25  ;;  %v2778_v35 = vld [vmem:[%s3787_s8] ss:$0 sm:$0xff] }
 0x5f5   :  { %v3009_v39 = vpop.f32.mrb[36].mxu1  ;;  %v2284_v40 = vadd.f32 %v2283_v23, %v2235_v38  ;;  %v2299_v29 = vmul.f32 0.0001, %v2281_v37  ;;  %vm2295_vm4 = vcmp.ge.f32.partialorder %v2281_v37, 0.0 }
 0x5f6   :  { %v3010_v41 = vpop.f32.mrb[37].mxu1 }
 0x5f7   :  { %v3011_v42 = vadd.f32 %v3010_v41, %v3009_v39  ;;  %v3012_v43 = vpop.f32.mrb[38].mxu1  ;;  %v2300_v56 = vmul.f32 0.0001, %v2284_v40  ;;  %vm2296_vm6 = vcmp.ge.f32.partialorder %v2284_v40, 0.0  ;;  %v2303_v62 = vsel %vm2295_vm4, %v2281_v37, %v2299_v29 }
 0x5f8   :  { %v3013_v45 = vpop.f32.mrb[39].mxu1 }
 0x5f9   :  { %v2240_v46 = vadd.f32 %v3011_v42, %v2743_v25  ;;  %v3014_v47 = vadd.f32 %v3013_v45, %v3012_v43  ;;  %v2304_v6 = vsel %vm2296_vm6, %v2284_v40, %v2300_v56 }
 0x5fb   :  { %v2289_v48 = vadd.f32 %v3182_v20, %v2240_v46  ;;  %v2243_v49 = vadd.f32 %v3014_v47, %v2743_v25 }
 0x5fd   :  { %v2292_v50 = vadd.f32 %v3183_v22, %v2243_v49  ;;  %v2301_v51 = vmul.f32 0.0001, %v2289_v48  ;;  %vm2297_vm3 = vcmp.ge.f32.partialorder %v2289_v48, 0.0 }
 0x5ff   :  { %v2302_v55 = vmul.f32 0.0001, %v2292_v50  ;;  %vm2298_vm5 = vcmp.ge.f32.partialorder %v2292_v50, 0.0  ;;  %v2305_v58 = vsel %vm2297_vm3, %v2289_v48, %v2301_v51 }
 0x601   :  { %v2306_v3 = vsel %vm2298_vm5, %v2292_v50, %v2302_v55 }
 0x60d   :  { %v3202_v54 = vpop.f32.mrb[40].mxu1 }
 0x60e   :  { %v2423_v31 = vadd.f32 %v3202_v54, %v2769_v52  ;;  %v2414_v57 = vpop.f32.mrb[41].mxu1 }
 0x60f   :  { %v2415_v59 = vadd.f32 %v2769_v52, %v2414_v57  ;;  %v3203_v60 = vpop.f32.mrb[42].mxu1 }
 0x610   :  { %v2431_v61 = vadd.f32 %v2423_v31, %v2305_v58  ;;  %v2426_v26 = vadd.f32 %v3203_v60, %v2769_v52  ;;  %v2417_v1 = vpop.f32.mrb[43].mxu1 }
 0x611   :  { %v2429_v2 = vadd.f32 %v2415_v59, %v2303_v62  ;;  %v2418_v4 = vadd.f32 %v2769_v52, %v2417_v1 }
 0x612   :  { %v2439_v5 = vmul.f32 0.01, %v2431_v61  ;;  %v2432_v28 = vadd.f32 %v2426_v26, %v2306_v3  ;;  %vm2435_vm7 = vcmp.ge.f32.partialorder %v2431_v61, 0.0 }
 0x613   :  { %v2437_v7 = vmul.f32 0.01, %v2429_v2  ;;  %v2430_v8 = vadd.f32 %v2418_v4, %v2304_v6  ;;  %vm2433_vm8 = vcmp.ge.f32.partialorder %v2429_v2, 0.0 }
 0x614   :  { %vm2436_vm9 = vcmp.ge.f32.partialorder %v2432_v28, 0.0  ;;  %v2440_v9 = vmul.f32 0.01, %v2432_v28  ;;  %v2443_v11 = vsel %vm2435_vm7, %v2431_v61, %v2439_v5 }
 0x615   :  { %vm2434_vm10 = vcmp.ge.f32.partialorder %v2430_v8, 0.0  ;;  %v2438_v10 = vmul.f32 0.01, %v2430_v8  ;;  %v2441_v13 = vsel %vm2433_vm8, %v2429_v2, %v2437_v7 }
 0x616   :  { %v2444_v12 = vsel %vm2436_vm9, %v2432_v28, %v2440_v9 }
 0x617   :  { %v2452_v44 = vmax.f32 %v2443_v11, %v2444_v12  ;;  %v2442_v14 = vsel %vm2434_vm10, %v2430_v8, %v2438_v10 }
 0x618   :  { %v2445_v53 = vmax.f32 %v2441_v13, %v2442_v14 }
 0x619   :  { %v2453_v0 = vrot.slane %v2452_v44, 4 }
 0x61a   :  { %v2446_v15 = vrot.slane %v2445_v53, 4 }
 0x61b   :  { %v2454_v16 = vmax.f32 %v2452_v44, %v2453_v0 }
 0x61c   :  { %v2447_v63 = vmax.f32 %v2445_v53, %v2446_v15 }
 0x61d   :  { %v2455_v27 = vrot.slane %v2454_v16, 2 }
 0x61e   :  { %v2448_v17 = vrot.slane %v2447_v63, 2 }
 0x61f   :  { %v2456_v18 = vmax.f32 %v2454_v16, %v2455_v27 }
 0x620   :  { %v2449_v19 = vmax.f32 %v2447_v63, %v2448_v17 }
 0x621   :  { %v2457_v20 = vrot.slane %v2456_v18, 1 }
 0x622   :  { %v2450_v21 = vrot.slane %v2449_v19, 1 }
 0x623   :  { %v2458_v22 = vmax.f32 %v2456_v18, %v2457_v20 }
 0x624   :  { %v2451_v33 = vmax.f32 %v2449_v19, %v2450_v21 }
 0x625   :  { %v2460_v23 = vpack.c.bf16 %v2458_v22, %v2458_v22 }
 0x626   :  { %v2459_v24 = vpack.c.bf16 %v2451_v33, %v2451_v33 }
 0x627   :  { %v2487_v25 = vunpack.c.l.b16 %v2460_v23 }
 0x628   :  { %v2486_v30 = vunpack.c.l.b16 %v2459_v24 }
 0x62a   :  { %v2489_v32 = vsel %vm2488_vm11, %v2487_v25, %v2486_v30 }
 0x62b   :  { %v2490_v34 = vpack.c.b16 %v2489_v32, %v2489_v32 }
 0x62d   :  { %3221 = vmatmul.mubr.bf16.vlgmr.msra.gmra.mrb[36].mxu0 %v2490_v34 }
 0x700   :  { %v2574_v36 = vpop.f32.mrb[36].mxu0 }
 0x701   :  { %v2575_v37 = vadd.f32 %v2778_v35, %v2574_v36  ;;  %v3222_v38 = vpop.f32.mrb[37].mxu0 }
 0x702   :  { %v2577_v39 = vpop.f32.mrb[38].mxu0 }
 0x703   :  { %v3223_v40 = vpop.f32.mrb[39].mxu0  ;;  %v2580_v41 = vmul.f32 %v2575_v37, %v2575_v37 }
 0x705   :  { %v2582_v42 = vsel %vm2581_vm12, %v2580_v41, 0.0 }
 0x706   :  { %2583 = vadd.xlane.f32.xlu0 %v2582_v42 }
 0x793   :  { %v2584_v43 = vpop.xlane.xlu0 %2583 }
 0x794   :  { %v2585_v45 = vmax.f32 %v2584_v43, 1e-24 }
 0x796   :  { %3401 = vrsqrt.f32 %v2585_v45 }
 0x7a0   :  { %v3402_v46 = vpop.eup %3401 }
 0x7a1   :  { %v2587_v47 = vmul.f32 %v3402_v46, %v2575_v37 }
 0x7a3   :  { %2588 = vst [vmem:[#allocation9] sm:$0x3] %v2587_v47 }
 0x7a4   :  { %3480 = shalt.err (!%p3477_p0)
}
 0x7a5   :  { %s3481_s18 = scalar_lea.hbm %s3788_s9, 32 }
 0x7a6   :  { %p3482_p1 = scmp.ne.s32.totalorder %s3788_s9, %s3481_s18  ;;  %p3485_p2 = scmp.lt.u32.totalorder %s3481_s18, %s3788_s9 }
 0x7a8   :  { %p3487_p3 = pnand %p3485_p2, %p3482_p1 }
 0x7aa   :  { %3490 = shalt.err (!%p3487_p3)
}
 0x7ab   :  { %2598 = dma.vmem_to_hbm [thread:$0]  %s2596_s15, 32, %s3788_s9, [#allocation5]  }
 0x7ac   :  { %3495 = dma.done.wait [#allocation5], 32  }
 0x7ad   :  { %3496 = vsyncadd [#allocation5], 4294967264 }
 0x7ae   :  { %2602 = vsyncpa [#allocation4], 1 }
 0x7af   :  { %2603 = vsyncpa [#allocation7], 1 }
 0x7b0   :  { %2604 = vsyncpa [#allocation5], 1 }

</bundles_post_ra>
